<compile_context>
chip_gen: v7x
topology: tpu7x:2x2x1
jax: 0.10.0
libtpu: 0.0.40
codegen_flags: <defaults>
</compile_context>

<pallas_src>
import jax
import jax.numpy as jnp
import numpy as np
from jax.experimental import pallas as pl
from jax.experimental.pallas import tpu as pltpu

IN_EPS = 1e-5          # nn.InstanceNorm2d default
BN_EPS = 1e-5          # nn.BatchNorm1d default
LRELU_SLOPE = 0.01     # nn.LeakyReLU() default
GUIDE_SLOPE = 0.2      # nn.LeakyReLU(0.2) in guide_base

# 3x3 tap order (row offset outer, col offset inner) — shared by kernel & masks
_SHIFTS = [(sy, sx) for sy in (-1, 0, 1) for sx in (-1, 0, 1)]


# ---------------------------------------------------------------------------
# guide_base gates:  sigmoid(L2(LeakyReLU0.2(BN(L1(g)))))  — all three heads
# fused into a single kernel (they share the same G16 input).
# ---------------------------------------------------------------------------
def _guide_gates_kernel(g_ref,
                        w1a, b1a, ga_a, be_a, w2a, b2a,
                        w1b, b1b, ga_b, be_b, w2b, b2b,
                        w1c, b1c, ga_c, be_c, w2c, b2c,
                        o1_ref, o2_ref, o3_ref):
    g = g_ref[...]                                            # (N, Gc)
    n = g.shape[0]

    def head(w1, b1, gma, bta, w2, b2, o_ref):
        h = jnp.dot(g, w1[...], preferred_element_type=jnp.float32) + b1[...]
        # BatchNorm1d with batch statistics, one-pass biased variance.
        mu = jnp.sum(h, axis=0, keepdims=True) * (1.0 / n)
        var = jnp.sum(h * h, axis=0, keepdims=True) * (1.0 / n) - mu * mu
        h = (h - mu) * jax.lax.rsqrt(var + BN_EPS)
        h = h * gma[...] + bta[...]
        h = jnp.where(h >= 0, h, GUIDE_SLOPE * h)             # LeakyReLU(0.2)
        o = jnp.dot(h, w2[...], preferred_element_type=jnp.float32) + b2[...]
        o_ref[...] = 1.0 / (1.0 + jnp.exp(-o))                # Sigmoid

    head(w1a, b1a, ga_a, be_a, w2a, b2a, o1_ref)
    head(w1b, b1b, ga_b, be_b, w2b, b2b, o2_ref)
    head(w1c, b1c, ga_c, be_c, w2c, b2c, o3_ref)


def _guide_gates(p1, p2, p3, g):
    """g: (N, Gc) f32 -> (gate1 (N,Xc1), gate2 (N,Xc2), gate3 (N,Xc3))."""
    n, _ = g.shape

    def head_args(p):
        hc = p["w1"].shape[0]
        xc = p["w2"].shape[0]
        return [jnp.transpose(p["w1"]),          # (Gc, Hc)
                p["b1"].reshape(1, hc),
                p["gamma"].reshape(1, hc),
                p["beta"].reshape(1, hc),
                jnp.transpose(p["w2"]),          # (Hc, Xc)
                p["b2"].reshape(1, xc)], xc

    a1, xc1 = head_args(p1)
    a2, xc2 = head_args(p2)
    a3, xc3 = head_args(p3)
    args = [g] + a1 + a2 + a3
    in_specs = [pl.BlockSpec(a.shape, lambda i: (0, 0)) for a in args]
    out_shapes = (jax.ShapeDtypeStruct((n, xc1), jnp.float32),
                  jax.ShapeDtypeStruct((n, xc2), jnp.float32),
                  jax.ShapeDtypeStruct((n, xc3), jnp.float32))
    out_specs = [pl.BlockSpec((n, xc1), lambda i: (0, 0)),
                 pl.BlockSpec((n, xc2), lambda i: (0, 0)),
                 pl.BlockSpec((n, xc3), lambda i: (0, 0))]
    return pl.pallas_call(
        _guide_gates_kernel,
        out_shape=out_shapes,
        grid_spec=pltpu.PrefetchScalarGridSpec(
            num_scalar_prefetch=0,
            grid=(1,),
            in_specs=in_specs,
            out_specs=out_specs,
        ),
        compiler_params=pltpu.CompilerParams(
            dimension_semantics=("arbitrary",)),
    )(*args)


# ---------------------------------------------------------------------------
# Fused residual conv block:
#   x' = x * (1 + gate)                      (guide_base gating, optional)
#   y  = LeakyReLU(InstanceNorm(conv3x3([x'; grad])))  + conv1x1([x'; grad])
# with the grad_pred 1x1 conv and the concat pre-folded into the weights.
# ---------------------------------------------------------------------------
def _make_res_block_kernel(nb, cout, hw, w_dim, has_grad, has_gate):
    def kernel(*refs):
        it = iter(refs)
        x_ref = next(it)                           # (nb, Cx, HW)
        g_ref = next(it) if has_grad else None     # (nb, 2, HW)
        gate_ref = next(it) if has_gate else None  # (nb, Cx, 1)
        m_ref = next(it)                           # (9, 1, HW) edge masks (f32)
        wx_ref = next(it)                          # (3, 3, Cout, Cx)
        wg_ref = next(it) if has_grad else None    # (3, 3, Cout, 2)
        wsx_ref = next(it)                         # (Cout, Cx)
        wsg_ref = next(it) if has_grad else None   # (Cout, 2)
        o_ref = next(it)                           # (nb, Cout, HW)

        for n in range(nb):
            x_n = x_ref[n]                                    # (Cx, HW)
            if has_gate:
                x_n = x_n * (1.0 + gate_ref[n])               # (Cx,1) broadcast
            if has_grad:
                g_n = g_ref[n]                                # (2, HW)

            acc = jnp.zeros((cout, hw), jnp.float32)
            for t, (sy, sx) in enumerate(_SHIFTS):
                ky, kx = sy + 1, sx + 1
                y = jnp.dot(wx_ref[ky, kx], x_n,
                            preferred_element_type=jnp.float32)   # (Cout, HW)
                if has_grad:
                    wg = wg_ref[ky, kx]                       # (Cout, 2)
                    y = y + wg[:, 0:1] * g_n[0:1, :] + wg[:, 1:2] * g_n[1:2, :]
                s = sy * w_dim + sx
                if s != 0:
                    # z[:, p] = y[:, p + s]; wrapped entries are masked below.
                    y = jnp.concatenate([y[:, s:], y[:, :s]], axis=1)
                    y = y * m_ref[t]
                acc = acc + y

            # InstanceNorm2d (per image & channel over H*W), one-pass stats.
            mean = jnp.sum(acc, axis=1, keepdims=True) * (1.0 / hw)
            var = jnp.sum(acc * acc, axis=1, keepdims=True) * (1.0 / hw) \
                - mean * mean
            z = (acc - mean) * jax.lax.rsqrt(var + IN_EPS)
            z = jnp.where(z >= 0, z, LRELU_SLOPE * z)         # LeakyReLU(0.01)

            # Residual 1x1 projection of the (gated) block input.
            skip = jnp.dot(wsx_ref[...], x_n, preferred_element_type=jnp.float32)
            if has_grad:
                wsg = wsg_ref[...]
                skip = skip + wsg[:, 0:1] * g_n[0:1, :] + wsg[:, 1:2] * g_n[1:2, :]

            o_ref[n] = (z + skip).astype(o_ref.dtype)

    return kernel


def _make_tap_masks(h_dim, w_dim):
    """(9, 1, H*W) float32 validity masks, one per 3x3 tap (host-side, tiny)."""
    hw = h_dim * w_dim
    pos = np.arange(hw)
    row, col = pos // w_dim, pos % w_dim
    masks = np.zeros((9, 1, hw), np.float32)
    for t, (sy, sx) in enumerate(_SHIFTS):
        valid = ((row + sy >= 0) & (row + sy < h_dim) &
                 (col + sx >= 0) & (col + sx < w_dim))
        masks[t, 0] = valid.astype(np.float32)
    return jnp.asarray(masks)


def _res_block(x, grad, gate, masks, wts, h_dim, w_dim, nb):
    """x: (N, Cx, HW); grad: (N, 2, HW) or None; gate: (N, Cx) or None."""
    n, cx, hw = x.shape
    cout = wts["wx"].shape[2]
    has_grad = wts["wg"] is not None
    has_gate = gate is not None
    assert n % nb == 0 and cx == wts["wx"].shape[3]

    inputs = [x]
    in_specs = [pl.BlockSpec((nb, cx, hw), lambda b: (b, 0, 0))]
    if has_grad:
        inputs.append(grad)
        in_specs.append(pl.BlockSpec((nb, 2, hw), lambda b: (b, 0, 0)))
    if has_gate:
        inputs.append(gate.reshape(n, cx, 1))          # free reshape
        in_specs.append(pl.BlockSpec((nb, cx, 1), lambda b: (b, 0, 0)))
    inputs.append(masks)
    in_specs.append(pl.BlockSpec((9, 1, hw), lambda b: (0, 0, 0)))
    inputs.append(wts["wx"])
    in_specs.append(pl.BlockSpec((3, 3, cout, cx), lambda b: (0, 0, 0, 0)))
    if has_grad:
        inputs.append(wts["wg"])
        in_specs.append(pl.BlockSpec((3, 3, cout, 2), lambda b: (0, 0, 0, 0)))
    inputs.append(wts["wsx"])
    in_specs.append(pl.BlockSpec((cout, cx), lambda b: (0, 0)))
    if has_grad:
        inputs.append(wts["wsg"])
        in_specs.append(pl.BlockSpec((cout, 2), lambda b: (0, 0)))

    # Explicit VMEM budget: double-buffered activation blocks + weights,
    # capped well inside v7x's 64 MiB physical VMEM.
    blk_bytes = 4 * (nb * cx * hw + nb * cout * hw
                     + (nb * 2 * hw if has_grad else 0)
                     + (nb * cx if has_gate else 0) + 9 * hw)
    w_bytes = 4 * (10 * cout * cx + (10 * cout * 2 if has_grad else 0))
    vmem_limit = int(min(48 * 2**20, max(16 * 2**20, 4 * blk_bytes + 2 * w_bytes)))

    kernel = _make_res_block_kernel(nb, cout, hw, w_dim, has_grad, has_gate)
    return pl.pallas_call(
        kernel,
        out_shape=jax.ShapeDtypeStruct((n, cout, hw), jnp.float32),
        grid_spec=pltpu.PrefetchScalarGridSpec(
            num_scalar_prefetch=0,
            grid=(n // nb,),
            in_specs=in_specs,
            out_specs=pl.BlockSpec((nb, cout, hw), lambda b: (b, 0, 0)),
        ),
        compiler_params=pltpu.CompilerParams(
            dimension_semantics=("parallel",),
            vmem_limit_bytes=vmem_limit),
    )(*inputs)


# ---------------------------------------------------------------------------
# Host-side parameter folding (grad_pred 1x1 + concat folded into the block)
# ---------------------------------------------------------------------------
def _fold_block_weights(conv_p, grad_w):
    w3 = conv_p["w3"]                       # (Cout, Cin_total, 3, 3) torch OIHW
    ws = conv_p["wskip"][:, :, 0, 0]        # (Cout, Cin_total)
    cx = w3.shape[1] - (0 if grad_w is None else grad_w.shape[0])
    wx = jnp.transpose(w3[:, :cx], (2, 3, 0, 1))          # (3, 3, Cout, Cx)
    wsx = ws[:, :cx]                                      # (Cout, Cx)
    if grad_w is None:
        return dict(wx=wx, wg=None, wsx=wsx, wsg=None)
    w1 = grad_w[:, :, 0, 0]                               # (2, 2) grad_pred 1x1
    wg = jnp.einsum("omhw,mi->hwoi", w3[:, cx:], w1)      # (3, 3, Cout, 2)
    wsg = jnp.einsum("om,mi->oi", ws[:, cx:], w1)         # (Cout, 2)
    return dict(wx=wx, wg=wg, wsx=wsx, wsg=wsg)


def _pick_nb(n):
    # Amortize the ~0.35us/step overhead over several small images, but keep
    # >=2 grid steps so v7x's two TensorCores can split the batch.
    for cand in (8, 4, 2):
        if n % cand == 0 and n // cand >= 2:
            return cand
    return 1


# ---------------------------------------------------------------------------
# Full Decoder forward
# ---------------------------------------------------------------------------
def decoder_forward(params, x_nchw, g16, grad_map_nchw):
    n, c0, h_dim, w_dim = x_nchw.shape
    hw = h_dim * w_dim
    nb = _pick_nb(n)

    # Free reshapes only — activations never get transposed in HBM.
    x = x_nchw.reshape(n, c0, hw).astype(jnp.float32)
    grad = grad_map_nchw.reshape(n, 2, hw).astype(jnp.float32)
    g = g16.reshape(n, -1).astype(jnp.float32)
    masks = _make_tap_masks(h_dim, w_dim)

    gate1, gate2, gate3 = _guide_gates(params["guide1"], params["guide2"],
                                       params["guide3"], g)

    blk0 = _fold_block_weights(params["conv_input"], params["grad_pred_1"])
    blk1 = _fold_block_weights(params["conv1"], params["grad_pred_2"])
    blk2 = _fold_block_weights(params["conv2"], params["grad_pred_3"])
    blk3 = _fold_block_weights(params["conv3"], None)

    h0 = _res_block(x,  grad, None,  masks, blk0, h_dim, w_dim, nb)  # (N,64,HW)
    h1 = _res_block(h0, grad, gate1, masks, blk1, h_dim, w_dim, nb)  # (N,32,HW)
    h2 = _res_block(h1, grad, gate2, masks, blk2, h_dim, w_dim, nb)  # (N,16,HW)
    h3 = _res_block(h2, None, gate3, masks, blk3, h_dim, w_dim, nb)  # (N, 1,HW)
    return h3.reshape(n, 1, h_dim, w_dim)


# ---------------------------------------------------------------------------
# Plain-JAX reference (same assumed semantics as the PyTorch module)
# ---------------------------------------------------------------------------
def _reference(params, x, g16, grad_map):
    def conv(xx, w, pad):
        return jax.lax.conv_general_dilated(
            xx, w, (1, 1), pad, dimension_numbers=("NCHW", "OIHW", "NCHW"))

    def res_block(p, xin):
        z = conv(xin, p["w3"], "SAME")
        mean = z.mean(axis=(2, 3), keepdims=True)
        var = ((z - mean) ** 2).mean(axis=(2, 3), keepdims=True)
        zn = (z - mean) / jnp.sqrt(var + IN_EPS)
        zn = jnp.where(zn >= 0, zn, LRELU_SLOPE * zn)
        return zn + conv(xin, p["wskip"], "VALID")

    def guide(p, xb, gg):
        gg = gg.reshape(gg.shape[0], gg.shape[1])
        h = gg @ p["w1"].T + p["b1"]
        mu = h.mean(axis=0, keepdims=True)
        var = ((h - mu) ** 2).mean(axis=0, keepdims=True)
        h = (h - mu) / jnp.sqrt(var + BN_EPS) * p["gamma"] + p["beta"]
        h = jnp.where(h >= 0, h, GUIDE_SLOPE * h)
        y = jax.nn.sigmoid(h @ p["w2"].T + p["b2"])
        return xb + xb * y.reshape(y.shape[0], y.shape[1], 1, 1)

    x = jnp.concatenate([x, conv(grad_map, params["grad_pred_1"], "VALID")], 1)
    x = res_block(params["conv_input"], x)
    x = guide(params["guide1"], x, g16)
    x = jnp.concatenate([x, conv(grad_map, params["grad_pred_2"], "VALID")], 1)
    x = res_block(params["conv1"], x)
    x = guide(params["guide2"], x, g16)
    x = jnp.concatenate([x, conv(grad_map, params["grad_pred_3"], "VALID")], 1)
    x = res_block(params["conv2"], x)
    x = guide(params["guide3"], x, g16)
    return res_block(params["conv3"], x)


def init_params(key):
    keys = iter(jax.random.split(key, 32))

    def conv(o, i, k):
        return jax.random.normal(next(keys), (o, i, k, k), jnp.float32) / np.sqrt(i * k * k)

    def lin(o, i):
        return jax.random.normal(next(keys), (o, i), jnp.float32) / np.sqrt(i)

    def guide(xc):
        return dict(w1=lin(128, 256),
                    b1=0.1 * jax.random.normal(next(keys), (128,), jnp.float32),
                    gamma=jnp.ones((128,), jnp.float32),
                    beta=jnp.zeros((128,), jnp.float32),
                    w2=lin(xc, 128),
                    b2=0.1 * jax.random.normal(next(keys), (xc,), jnp.float32))

    return dict(
        grad_pred_1=conv(2, 2, 1), grad_pred_2=conv(2, 2, 1), grad_pred_3=conv(2, 2, 1),
        conv_input=dict(w3=conv(64, 130, 3), wskip=conv(64, 130, 1)),
        conv1=dict(w3=conv(32, 66, 3), wskip=conv(32, 66, 1)),
        conv2=dict(w3=conv(16, 34, 3), wskip=conv(16, 34, 1)),
        conv3=dict(w3=conv(1, 16, 3), wskip=conv(1, 16, 1)),
        guide1=guide(64), guide2=guide(32), guide3=guide(16))


if __name__ == "__main__":
    key = jax.random.PRNGKey(0)
    kp, kx, kg, km = jax.random.split(key, 4)

    N, C, H, W = 2, 128, 16, 16                 # channel_0*8 = 128 input channels
    params = init_params(kp)
    x = jax.random.normal(kx, (N, C, H, W), jnp.float32)
    g16 = jax.random.normal(kg, (N, 256, 1, 1), jnp.float32)   # 16*16 guide
    grad_map = jax.random.normal(km, (N, 2, H, W), jnp.float32)

    out = decoder_forward(params, x, g16, grad_map)
    out = jax.block_until_ready(out)
    assert out.shape == (N, 1, H, W)

    ref = jax.block_until_ready(_reference(params, x, g16, grad_map))
    np.testing.assert_allclose(np.asarray(out), np.asarray(ref),
                               rtol=2e-3, atol=2e-3)

    print("KERNEL_OK")
</pallas_src>

<mosaic_0001>
module attributes {stable_mosaic.version = 11 : i64} {
  func.func @_guide_gates_kernel(%arg0: i32, %arg1: memref<2x256xf32, #tpu.memory_space<vmem>>, %arg2: memref<256x128xf32, #tpu.memory_space<vmem>>, %arg3: memref<1x128xf32, #tpu.memory_space<vmem>>, %arg4: memref<1x128xf32, #tpu.memory_space<vmem>>, %arg5: memref<1x128xf32, #tpu.memory_space<vmem>>, %arg6: memref<128x64xf32, #tpu.memory_space<vmem>>, %arg7: memref<1x64xf32, #tpu.memory_space<vmem>>, %arg8: memref<256x128xf32, #tpu.memory_space<vmem>>, %arg9: memref<1x128xf32, #tpu.memory_space<vmem>>, %arg10: memref<1x128xf32, #tpu.memory_space<vmem>>, %arg11: memref<1x128xf32, #tpu.memory_space<vmem>>, %arg12: memref<128x32xf32, #tpu.memory_space<vmem>>, %arg13: memref<1x32xf32, #tpu.memory_space<vmem>>, %arg14: memref<256x128xf32, #tpu.memory_space<vmem>>, %arg15: memref<1x128xf32, #tpu.memory_space<vmem>>, %arg16: memref<1x128xf32, #tpu.memory_space<vmem>>, %arg17: memref<1x128xf32, #tpu.memory_space<vmem>>, %arg18: memref<128x16xf32, #tpu.memory_space<vmem>>, %arg19: memref<1x16xf32, #tpu.memory_space<vmem>>, %arg20: memref<2x64xf32, #tpu.memory_space<vmem>>, %arg21: memref<2x32xf32, #tpu.memory_space<vmem>>, %arg22: memref<2x16xf32, #tpu.memory_space<vmem>>) attributes {dimension_semantics = [#tpu.dimension_semantics<arbitrary>], iteration_bounds = array<i64: 1>, scalar_prefetch = 0 : i64, scratch_operands = 0 : i64, tpu.core_type = #tpu.core_type<tc>, window_params = [{pipeline_mode = #tpu.pipeline_mode<synchronous>, transform_indices = @transform_0, window_bounds = array<i64: 2, 256>}, {pipeline_mode = #tpu.pipeline_mode<synchronous>, transform_indices = @transform_1, window_bounds = array<i64: 256, 128>}, {pipeline_mode = #tpu.pipeline_mode<synchronous>, transform_indices = @transform_2, window_bounds = array<i64: 1, 128>}, {pipeline_mode = #tpu.pipeline_mode<synchronous>, transform_indices = @transform_3, window_bounds = array<i64: 1, 128>}, {pipeline_mode = #tpu.pipeline_mode<synchronous>, transform_indices = @transform_4, window_bounds = array<i64: 1, 128>}, {pipeline_mode = #tpu.pipeline_mode<synchronous>, transform_indices = @transform_5, window_bounds = array<i64: 128, 64>}, {pipeline_mode = #tpu.pipeline_mode<synchronous>, transform_indices = @transform_6, window_bounds = array<i64: 1, 64>}, {pipeline_mode = #tpu.pipeline_mode<synchronous>, transform_indices = @transform_7, window_bounds = array<i64: 256, 128>}, {pipeline_mode = #tpu.pipeline_mode<synchronous>, transform_indices = @transform_8, window_bounds = array<i64: 1, 128>}, {pipeline_mode = #tpu.pipeline_mode<synchronous>, transform_indices = @transform_9, window_bounds = array<i64: 1, 128>}, {pipeline_mode = #tpu.pipeline_mode<synchronous>, transform_indices = @transform_10, window_bounds = array<i64: 1, 128>}, {pipeline_mode = #tpu.pipeline_mode<synchronous>, transform_indices = @transform_11, window_bounds = array<i64: 128, 32>}, {pipeline_mode = #tpu.pipeline_mode<synchronous>, transform_indices = @transform_12, window_bounds = array<i64: 1, 32>}, {pipeline_mode = #tpu.pipeline_mode<synchronous>, transform_indices = @transform_13, window_bounds = array<i64: 256, 128>}, {pipeline_mode = #tpu.pipeline_mode<synchronous>, transform_indices = @transform_14, window_bounds = array<i64: 1, 128>}, {pipeline_mode = #tpu.pipeline_mode<synchronous>, transform_indices = @transform_15, window_bounds = array<i64: 1, 128>}, {pipeline_mode = #tpu.pipeline_mode<synchronous>, transform_indices = @transform_16, window_bounds = array<i64: 1, 128>}, {pipeline_mode = #tpu.pipeline_mode<synchronous>, transform_indices = @transform_17, window_bounds = array<i64: 128, 16>}, {pipeline_mode = #tpu.pipeline_mode<synchronous>, transform_indices = @transform_18, window_bounds = array<i64: 1, 16>}, {pipeline_mode = #tpu.pipeline_mode<synchronous>, transform_indices = @transform_19, window_bounds = array<i64: 2, 64>}, {pipeline_mode = #tpu.pipeline_mode<synchronous>, transform_indices = @transform_20, window_bounds = array<i64: 2, 32>}, {pipeline_mode = #tpu.pipeline_mode<synchronous>, transform_indices = @transform_21, window_bounds = array<i64: 2, 16>}]} {
    %c0 = arith.constant 0 : index
    %c0_0 = arith.constant 0 : index
    %0 = vector.load %arg1[%c0, %c0_0] : memref<2x256xf32, #tpu.memory_space<vmem>>, vector<2x256xf32>
    %c0_1 = arith.constant 0 : index
    %c0_2 = arith.constant 0 : index
    %1 = vector.load %arg2[%c0_1, %c0_2] : memref<256x128xf32, #tpu.memory_space<vmem>>, vector<256x128xf32>
    %cst = arith.constant dense<0.000000e+00> : vector<2x128xf32>
    %2 = tpu.matmul %0, %1, %cst {dimension_numbers = #tpu.dot_dimension_numbers<[1], [0], [0], [1], [0, 0, 1, 1], [], []>} : vector<2x256xf32>, vector<256x128xf32>, vector<2x128xf32> -> vector<2x128xf32>
    %c0_3 = arith.constant 0 : index
    %c0_4 = arith.constant 0 : index
    %3 = vector.load %arg3[%c0_3, %c0_4] : memref<1x128xf32, #tpu.memory_space<vmem>>, vector<1x128xf32>
    %4 = vector.broadcast %3 : vector<1x128xf32> to vector<2x128xf32>
    %5 = arith.addf %2, %4 : vector<2x128xf32>
    %cst_5 = arith.constant dense<0.000000e+00> : vector<128xf32>
    %6 = vector.multi_reduction <add>, %5, %cst_5 [0] : vector<2x128xf32> to vector<128xf32>
    %7 = vector.shape_cast %6 : vector<128xf32> to vector<1x128xf32>
    %cst_6 = arith.constant 5.000000e-01 : f32
    %8 = vector.broadcast %cst_6 : f32 to vector<1x128xf32>
    %9 = arith.mulf %7, %8 : vector<1x128xf32>
    %10 = arith.mulf %5, %5 : vector<2x128xf32>
    %cst_7 = arith.constant dense<0.000000e+00> : vector<128xf32>
    %11 = vector.multi_reduction <add>, %10, %cst_7 [0] : vector<2x128xf32> to vector<128xf32>
    %12 = vector.shape_cast %11 : vector<128xf32> to vector<1x128xf32>
    %cst_8 = arith.constant 5.000000e-01 : f32
    %13 = vector.broadcast %cst_8 : f32 to vector<1x128xf32>
    %14 = arith.mulf %12, %13 : vector<1x128xf32>
    %15 = arith.mulf %9, %9 : vector<1x128xf32>
    %16 = arith.subf %14, %15 : vector<1x128xf32>
    %17 = vector.broadcast %9 : vector<1x128xf32> to vector<2x128xf32>
    %18 = arith.subf %5, %17 : vector<2x128xf32>
    %cst_9 = arith.constant 9.99999974E-6 : f32
    %19 = vector.broadcast %cst_9 : f32 to vector<1x128xf32>
    %20 = arith.addf %16, %19 : vector<1x128xf32>
    %21 = math.rsqrt %20 : vector<1x128xf32>
    %22 = vector.broadcast %21 : vector<1x128xf32> to vector<2x128xf32>
    %23 = arith.mulf %18, %22 : vector<2x128xf32>
    %c0_10 = arith.constant 0 : index
    %c0_11 = arith.constant 0 : index
    %24 = vector.load %arg4[%c0_10, %c0_11] : memref<1x128xf32, #tpu.memory_space<vmem>>, vector<1x128xf32>
    %25 = vector.broadcast %24 : vector<1x128xf32> to vector<2x128xf32>
    %26 = arith.mulf %23, %25 : vector<2x128xf32>
    %c0_12 = arith.constant 0 : index
    %c0_13 = arith.constant 0 : index
    %27 = vector.load %arg5[%c0_12, %c0_13] : memref<1x128xf32, #tpu.memory_space<vmem>>, vector<1x128xf32>
    %28 = vector.broadcast %27 : vector<1x128xf32> to vector<2x128xf32>
    %29 = arith.addf %26, %28 : vector<2x128xf32>
    %cst_14 = arith.constant 0.000000e+00 : f32
    %30 = vector.broadcast %cst_14 : f32 to vector<2x128xf32>
    %31 = arith.cmpf oge, %29, %30 : vector<2x128xf32>
    %cst_15 = arith.constant 2.000000e-01 : f32
    %32 = vector.broadcast %cst_15 : f32 to vector<2x128xf32>
    %33 = arith.mulf %32, %29 : vector<2x128xf32>
    %34 = arith.select %31, %29, %33 : vector<2x128xi1>, vector<2x128xf32>
    %c0_16 = arith.constant 0 : index
    %c0_17 = arith.constant 0 : index
    %35 = vector.load %arg6[%c0_16, %c0_17] : memref<128x64xf32, #tpu.memory_space<vmem>>, vector<128x64xf32>
    %cst_18 = arith.constant dense<0.000000e+00> : vector<2x64xf32>
    %36 = tpu.matmul %34, %35, %cst_18 {dimension_numbers = #tpu.dot_dimension_numbers<[1], [0], [0], [1], [0, 0, 1, 1], [], []>} : vector<2x128xf32>, vector<128x64xf32>, vector<2x64xf32> -> vector<2x64xf32>
    %c0_19 = arith.constant 0 : index
    %c0_20 = arith.constant 0 : index
    %37 = vector.load %arg7[%c0_19, %c0_20] : memref<1x64xf32, #tpu.memory_space<vmem>>, vector<1x64xf32>
    %38 = vector.broadcast %37 : vector<1x64xf32> to vector<2x64xf32>
    %39 = arith.addf %36, %38 : vector<2x64xf32>
    %cst_21 = arith.constant 0.000000e+00 : f32
    %40 = vector.broadcast %cst_21 : f32 to vector<2x64xf32>
    %41 = arith.subf %40, %39 : vector<2x64xf32>
    %42 = math.exp %41 : vector<2x64xf32>
    %cst_22 = arith.constant 1.000000e+00 : f32
    %43 = vector.broadcast %cst_22 : f32 to vector<2x64xf32>
    %44 = arith.addf %43, %42 : vector<2x64xf32>
    %cst_23 = arith.constant 1.000000e+00 : f32
    %45 = vector.broadcast %cst_23 : f32 to vector<2x64xf32>
    %46 = arith.divf %45, %44 : vector<2x64xf32>
    %c0_24 = arith.constant 0 : index
    %c0_25 = arith.constant 0 : index
    %47 = vector.load %arg20[%c0_24, %c0_25] : memref<2x64xf32, #tpu.memory_space<vmem>>, vector<2x64xf32>
    tpu.vector_store %arg20[%c0_24, %c0_25], %46 {strides = array<i32>} : memref<2x64xf32, #tpu.memory_space<vmem>>, vector<2x64xf32>,
    %c0_26 = arith.constant 0 : index
    %c0_27 = arith.constant 0 : index
    %48 = vector.load %arg8[%c0_26, %c0_27] : memref<256x128xf32, #tpu.memory_space<vmem>>, vector<256x128xf32>
    %cst_28 = arith.constant dense<0.000000e+00> : vector<2x128xf32>
    %49 = tpu.matmul %0, %48, %cst_28 {dimension_numbers = #tpu.dot_dimension_numbers<[1], [0], [0], [1], [0, 0, 1, 1], [], []>} : vector<2x256xf32>, vector<256x128xf32>, vector<2x128xf32> -> vector<2x128xf32>
    %c0_29 = arith.constant 0 : index
    %c0_30 = arith.constant 0 : index
    %50 = vector.load %arg9[%c0_29, %c0_30] : memref<1x128xf32, #tpu.memory_space<vmem>>, vector<1x128xf32>
    %51 = vector.broadcast %50 : vector<1x128xf32> to vector<2x128xf32>
    %52 = arith.addf %49, %51 : vector<2x128xf32>
    %cst_31 = arith.constant dense<0.000000e+00> : vector<128xf32>
    %53 = vector.multi_reduction <add>, %52, %cst_31 [0] : vector<2x128xf32> to vector<128xf32>
    %54 = vector.shape_cast %53 : vector<128xf32> to vector<1x128xf32>
    %cst_32 = arith.constant 5.000000e-01 : f32
    %55 = vector.broadcast %cst_32 : f32 to vector<1x128xf32>
    %56 = arith.mulf %54, %55 : vector<1x128xf32>
    %57 = arith.mulf %52, %52 : vector<2x128xf32>
    %cst_33 = arith.constant dense<0.000000e+00> : vector<128xf32>
    %58 = vector.multi_reduction <add>, %57, %cst_33 [0] : vector<2x128xf32> to vector<128xf32>
    %59 = vector.shape_cast %58 : vector<128xf32> to vector<1x128xf32>
    %cst_34 = arith.constant 5.000000e-01 : f32
    %60 = vector.broadcast %cst_34 : f32 to vector<1x128xf32>
    %61 = arith.mulf %59, %60 : vector<1x128xf32>
    %62 = arith.mulf %56, %56 : vector<1x128xf32>
    %63 = arith.subf %61, %62 : vector<1x128xf32>
    %64 = vector.broadcast %56 : vector<1x128xf32> to vector<2x128xf32>
    %65 = arith.subf %52, %64 : vector<2x128xf32>
    %cst_35 = arith.constant 9.99999974E-6 : f32
    %66 = vector.broadcast %cst_35 : f32 to vector<1x128xf32>
    %67 = arith.addf %63, %66 : vector<1x128xf32>
    %68 = math.rsqrt %67 : vector<1x128xf32>
    %69 = vector.broadcast %68 : vector<1x128xf32> to vector<2x128xf32>
    %70 = arith.mulf %65, %69 : vector<2x128xf32>
    %c0_36 = arith.constant 0 : index
    %c0_37 = arith.constant 0 : index
    %71 = vector.load %arg10[%c0_36, %c0_37] : memref<1x128xf32, #tpu.memory_space<vmem>>, vector<1x128xf32>
    %72 = vector.broadcast %71 : vector<1x128xf32> to vector<2x128xf32>
    %73 = arith.mulf %70, %72 : vector<2x128xf32>
    %c0_38 = arith.constant 0 : index
    %c0_39 = arith.constant 0 : index
    %74 = vector.load %arg11[%c0_38, %c0_39] : memref<1x128xf32, #tpu.memory_space<vmem>>, vector<1x128xf32>
    %75 = vector.broadcast %74 : vector<1x128xf32> to vector<2x128xf32>
    %76 = arith.addf %73, %75 : vector<2x128xf32>
    %cst_40 = arith.constant 0.000000e+00 : f32
    %77 = vector.broadcast %cst_40 : f32 to vector<2x128xf32>
    %78 = arith.cmpf oge, %76, %77 : vector<2x128xf32>
    %cst_41 = arith.constant 2.000000e-01 : f32
    %79 = vector.broadcast %cst_41 : f32 to vector<2x128xf32>
    %80 = arith.mulf %79, %76 : vector<2x128xf32>
    %81 = arith.select %78, %76, %80 : vector<2x128xi1>, vector<2x128xf32>
    %c0_42 = arith.constant 0 : index
    %c0_43 = arith.constant 0 : index
    %82 = vector.load %arg12[%c0_42, %c0_43] : memref<128x32xf32, #tpu.memory_space<vmem>>, vector<128x32xf32>
    %cst_44 = arith.constant dense<0.000000e+00> : vector<2x32xf32>
    %83 = tpu.matmul %81, %82, %cst_44 {dimension_numbers = #tpu.dot_dimension_numbers<[1], [0], [0], [1], [0, 0, 1, 1], [], []>} : vector<2x128xf32>, vector<128x32xf32>, vector<2x32xf32> -> vector<2x32xf32>
    %c0_45 = arith.constant 0 : index
    %c0_46 = arith.constant 0 : index
    %84 = vector.load %arg13[%c0_45, %c0_46] : memref<1x32xf32, #tpu.memory_space<vmem>>, vector<1x32xf32>
    %85 = vector.broadcast %84 : vector<1x32xf32> to vector<2x32xf32>
    %86 = arith.addf %83, %85 : vector<2x32xf32>
    %cst_47 = arith.constant 0.000000e+00 : f32
    %87 = vector.broadcast %cst_47 : f32 to vector<2x32xf32>
    %88 = arith.subf %87, %86 : vector<2x32xf32>
    %89 = math.exp %88 : vector<2x32xf32>
    %cst_48 = arith.constant 1.000000e+00 : f32
    %90 = vector.broadcast %cst_48 : f32 to vector<2x32xf32>
    %91 = arith.addf %90, %89 : vector<2x32xf32>
    %cst_49 = arith.constant 1.000000e+00 : f32
    %92 = vector.broadcast %cst_49 : f32 to vector<2x32xf32>
    %93 = arith.divf %92, %91 : vector<2x32xf32>
    %c0_50 = arith.constant 0 : index
    %c0_51 = arith.constant 0 : index
    %94 = vector.load %arg21[%c0_50, %c0_51] : memref<2x32xf32, #tpu.memory_space<vmem>>, vector<2x32xf32>
    tpu.vector_store %arg21[%c0_50, %c0_51], %93 {strides = array<i32>} : memref<2x32xf32, #tpu.memory_space<vmem>>, vector<2x32xf32>,
    %c0_52 = arith.constant 0 : index
    %c0_53 = arith.constant 0 : index
    %95 = vector.load %arg14[%c0_52, %c0_53] : memref<256x128xf32, #tpu.memory_space<vmem>>, vector<256x128xf32>
    %cst_54 = arith.constant dense<0.000000e+00> : vector<2x128xf32>
    %96 = tpu.matmul %0, %95, %cst_54 {dimension_numbers = #tpu.dot_dimension_numbers<[1], [0], [0], [1], [0, 0, 1, 1], [], []>} : vector<2x256xf32>, vector<256x128xf32>, vector<2x128xf32> -> vector<2x128xf32>
    %c0_55 = arith.constant 0 : index
    %c0_56 = arith.constant 0 : index
    %97 = vector.load %arg15[%c0_55, %c0_56] : memref<1x128xf32, #tpu.memory_space<vmem>>, vector<1x128xf32>
    %98 = vector.broadcast %97 : vector<1x128xf32> to vector<2x128xf32>
    %99 = arith.addf %96, %98 : vector<2x128xf32>
    %cst_57 = arith.constant dense<0.000000e+00> : vector<128xf32>
    %100 = vector.multi_reduction <add>, %99, %cst_57 [0] : vector<2x128xf32> to vector<128xf32>
    %101 = vector.shape_cast %100 : vector<128xf32> to vector<1x128xf32>
    %cst_58 = arith.constant 5.000000e-01 : f32
    %102 = vector.broadcast %cst_58 : f32 to vector<1x128xf32>
    %103 = arith.mulf %101, %102 : vector<1x128xf32>
    %104 = arith.mulf %99, %99 : vector<2x128xf32>
    %cst_59 = arith.constant dense<0.000000e+00> : vector<128xf32>
    %105 = vector.multi_reduction <add>, %104, %cst_59 [0] : vector<2x128xf32> to vector<128xf32>
    %106 = vector.shape_cast %105 : vector<128xf32> to vector<1x128xf32>
    %cst_60 = arith.constant 5.000000e-01 : f32
    %107 = vector.broadcast %cst_60 : f32 to vector<1x128xf32>
    %108 = arith.mulf %106, %107 : vector<1x128xf32>
    %109 = arith.mulf %103, %103 : vector<1x128xf32>
    %110 = arith.subf %108, %109 : vector<1x128xf32>
    %111 = vector.broadcast %103 : vector<1x128xf32> to vector<2x128xf32>
    %112 = arith.subf %99, %111 : vector<2x128xf32>
    %cst_61 = arith.constant 9.99999974E-6 : f32
    %113 = vector.broadcast %cst_61 : f32 to vector<1x128xf32>
    %114 = arith.addf %110, %113 : vector<1x128xf32>
    %115 = math.rsqrt %114 : vector<1x128xf32>
    %116 = vector.broadcast %115 : vector<1x128xf32> to vector<2x128xf32>
    %117 = arith.mulf %112, %116 : vector<2x128xf32>
    %c0_62 = arith.constant 0 : index
    %c0_63 = arith.constant 0 : index
    %118 = vector.load %arg16[%c0_62, %c0_63] : memref<1x128xf32, #tpu.memory_space<vmem>>, vector<1x128xf32>
    %119 = vector.broadcast %118 : vector<1x128xf32> to vector<2x128xf32>
    %120 = arith.mulf %117, %119 : vector<2x128xf32>
    %c0_64 = arith.constant 0 : index
    %c0_65 = arith.constant 0 : index
    %121 = vector.load %arg17[%c0_64, %c0_65] : memref<1x128xf32, #tpu.memory_space<vmem>>, vector<1x128xf32>
    %122 = vector.broadcast %121 : vector<1x128xf32> to vector<2x128xf32>
    %123 = arith.addf %120, %122 : vector<2x128xf32>
    %cst_66 = arith.constant 0.000000e+00 : f32
    %124 = vector.broadcast %cst_66 : f32 to vector<2x128xf32>
    %125 = arith.cmpf oge, %123, %124 : vector<2x128xf32>
    %cst_67 = arith.constant 2.000000e-01 : f32
    %126 = vector.broadcast %cst_67 : f32 to vector<2x128xf32>
    %127 = arith.mulf %126, %123 : vector<2x128xf32>
    %128 = arith.select %125, %123, %127 : vector<2x128xi1>, vector<2x128xf32>
    %c0_68 = arith.constant 0 : index
    %c0_69 = arith.constant 0 : index
    %129 = vector.load %arg18[%c0_68, %c0_69] : memref<128x16xf32, #tpu.memory_space<vmem>>, vector<128x16xf32>
    %cst_70 = arith.constant dense<0.000000e+00> : vector<2x16xf32>
    %130 = tpu.matmul %128, %129, %cst_70 {dimension_numbers = #tpu.dot_dimension_numbers<[1], [0], [0], [1], [0, 0, 1, 1], [], []>} : vector<2x128xf32>, vector<128x16xf32>, vector<2x16xf32> -> vector<2x16xf32>
    %c0_71 = arith.constant 0 : index
    %c0_72 = arith.constant 0 : index
    %131 = vector.load %arg19[%c0_71, %c0_72] : memref<1x16xf32, #tpu.memory_space<vmem>>, vector<1x16xf32>
    %132 = vector.broadcast %131 : vector<1x16xf32> to vector<2x16xf32>
    %133 = arith.addf %130, %132 : vector<2x16xf32>
    %cst_73 = arith.constant 0.000000e+00 : f32
    %134 = vector.broadcast %cst_73 : f32 to vector<2x16xf32>
    %135 = arith.subf %134, %133 : vector<2x16xf32>
    %136 = math.exp %135 : vector<2x16xf32>
    %cst_74 = arith.constant 1.000000e+00 : f32
    %137 = vector.broadcast %cst_74 : f32 to vector<2x16xf32>
    %138 = arith.addf %137, %136 : vector<2x16xf32>
    %cst_75 = arith.constant 1.000000e+00 : f32
    %139 = vector.broadcast %cst_75 : f32 to vector<2x16xf32>
    %140 = arith.divf %139, %138 : vector<2x16xf32>
    %c0_76 = arith.constant 0 : index
    %c0_77 = arith.constant 0 : index
    %141 = vector.load %arg22[%c0_76, %c0_77] : memref<2x16xf32, #tpu.memory_space<vmem>>, vector<2x16xf32>
    tpu.vector_store %arg22[%c0_76, %c0_77], %140 {strides = array<i32>} : memref<2x16xf32, #tpu.memory_space<vmem>>, vector<2x16xf32>,
    return
  }
  func.func @transform_0(%arg0: i32) -> (i32, i32) {
    %c0_i32 = arith.constant 0 : i32
    %c0_i32_0 = arith.constant 0 : i32
    %c0_i32_1 = arith.constant 0 : i32
    return %c0_i32, %c0_i32_0 : i32, i32
  }
  func.func @transform_1(%arg0: i32) -> (i32, i32) {
    %c0_i32 = arith.constant 0 : i32
    %c0_i32_0 = arith.constant 0 : i32
    %c0_i32_1 = arith.constant 0 : i32
    return %c0_i32, %c0_i32_0 : i32, i32
  }
  func.func @transform_2(%arg0: i32) -> (i32, i32) {
    %c0_i32 = arith.constant 0 : i32
    %c0_i32_0 = arith.constant 0 : i32
    %c0_i32_1 = arith.constant 0 : i32
    return %c0_i32, %c0_i32_0 : i32, i32
  }
  func.func @transform_3(%arg0: i32) -> (i32, i32) {
    %c0_i32 = arith.constant 0 : i32
    %c0_i32_0 = arith.constant 0 : i32
    %c0_i32_1 = arith.constant 0 : i32
    return %c0_i32, %c0_i32_0 : i32, i32
  }
  func.func @transform_4(%arg0: i32) -> (i32, i32) {
    %c0_i32 = arith.constant 0 : i32
    %c0_i32_0 = arith.constant 0 : i32
    %c0_i32_1 = arith.constant 0 : i32
    return %c0_i32, %c0_i32_0 : i32, i32
  }
  func.func @transform_5(%arg0: i32) -> (i32, i32) {
    %c0_i32 = arith.constant 0 : i32
    %c0_i32_0 = arith.constant 0 : i32
    %c0_i32_1 = arith.constant 0 : i32
    return %c0_i32, %c0_i32_0 : i32, i32
  }
  func.func @transform_6(%arg0: i32) -> (i32, i32) {
    %c0_i32 = arith.constant 0 : i32
    %c0_i32_0 = arith.constant 0 : i32
    %c0_i32_1 = arith.constant 0 : i32
    return %c0_i32, %c0_i32_0 : i32, i32
  }
  func.func @transform_7(%arg0: i32) -> (i32, i32) {
    %c0_i32 = arith.constant 0 : i32
    %c0_i32_0 = arith.constant 0 : i32
    %c0_i32_1 = arith.constant 0 : i32
    return %c0_i32, %c0_i32_0 : i32, i32
  }
  func.func @transform_8(%arg0: i32) -> (i32, i32) {
    %c0_i32 = arith.constant 0 : i32
    %c0_i32_0 = arith.constant 0 : i32
    %c0_i32_1 = arith.constant 0 : i32
    return %c0_i32, %c0_i32_0 : i32, i32
  }
  func.func @transform_9(%arg0: i32) -> (i32, i32) {
    %c0_i32 = arith.constant 0 : i32
    %c0_i32_0 = arith.constant 0 : i32
    %c0_i32_1 = arith.constant 0 : i32
    return %c0_i32, %c0_i32_0 : i32, i32
  }
  func.func @transform_10(%arg0: i32) -> (i32, i32) {
    %c0_i32 = arith.constant 0 : i32
    %c0_i32_0 = arith.constant 0 : i32
    %c0_i32_1 = arith.constant 0 : i32
    return %c0_i32, %c0_i32_0 : i32, i32
  }
  func.func @transform_11(%arg0: i32) -> (i32, i32) {
    %c0_i32 = arith.constant 0 : i32
    %c0_i32_0 = arith.constant 0 : i32
    %c0_i32_1 = arith.constant 0 : i32
    return %c0_i32, %c0_i32_0 : i32, i32
  }
  func.func @transform_12(%arg0: i32) -> (i32, i32) {
    %c0_i32 = arith.constant 0 : i32
    %c0_i32_0 = arith.constant 0 : i32
    %c0_i32_1 = arith.constant 0 : i32
    return %c0_i32, %c0_i32_0 : i32, i32
  }
  func.func @transform_13(%arg0: i32) -> (i32, i32) {
    %c0_i32 = arith.constant 0 : i32
    %c0_i32_0 = arith.constant 0 : i32
    %c0_i32_1 = arith.constant 0 : i32
    return %c0_i32, %c0_i32_0 : i32, i32
  }
  func.func @transform_14(%arg0: i32) -> (i32, i32) {
    %c0_i32 = arith.constant 0 : i32
    %c0_i32_0 = arith.constant 0 : i32
    %c0_i32_1 = arith.constant 0 : i32
    return %c0_i32, %c0_i32_0 : i32, i32
  }
  func.func @transform_15(%arg0: i32) -> (i32, i32) {
    %c0_i32 = arith.constant 0 : i32
    %c0_i32_0 = arith.constant 0 : i32
    %c0_i32_1 = arith.constant 0 : i32
    return %c0_i32, %c0_i32_0 : i32, i32
  }
  func.func @transform_16(%arg0: i32) -> (i32, i32) {
    %c0_i32 = arith.constant 0 : i32
    %c0_i32_0 = arith.constant 0 : i32
    %c0_i32_1 = arith.constant 0 : i32
    return %c0_i32, %c0_i32_0 : i32, i32
  }
  func.func @transform_17(%arg0: i32) -> (i32, i32) {
    %c0_i32 = arith.constant 0 : i32
    %c0_i32_0 = arith.constant 0 : i32
    %c0_i32_1 = arith.constant 0 : i32
    return %c0_i32, %c0_i32_0 : i32, i32
  }
  func.func @transform_18(%arg0: i32) -> (i32, i32) {
    %c0_i32 = arith.constant 0 : i32
    %c0_i32_0 = arith.constant 0 : i32
    %c0_i32_1 = arith.constant 0 : i32
    return %c0_i32, %c0_i32_0 : i32, i32
  }
  func.func @transform_19(%arg0: i32) -> (i32, i32) {
    %c0_i32 = arith.constant 0 : i32
    %c0_i32_0 = arith.constant 0 : i32
    %c0_i32_1 = arith.constant 0 : i32
    return %c0_i32, %c0_i32_0 : i32, i32
  }
  func.func @transform_20(%arg0: i32) -> (i32, i32) {
    %c0_i32 = arith.constant 0 : i32
    %c0_i32_0 = arith.constant 0 : i32
    %c0_i32_1 = arith.constant 0 : i32
    return %c0_i32, %c0_i32_0 : i32, i32
  }
  func.func @transform_21(%arg0: i32) -> (i32, i32) {
    %c0_i32 = arith.constant 0 : i32
    %c0_i32_0 = arith.constant 0 : i32
    %c0_i32_1 = arith.constant 0 : i32
    return %c0_i32, %c0_i32_0 : i32, i32
  }
}

</mosaic_0001>

<bundles_post_ra>
// kernel: tpu_custom_call.1
= control target key start
LH: loop header
LB: loop body
LE: loop exit
PB: predicated region body
PF: predicated region fallthrough
CT: control target
= control target key end

     0   :  { %s2204_s0 = inlined_call_operand.hbm [shape: f32[2,256], index: 0, kind: input, shape index: {}]   ;;  %s2205_s1 = inlined_call_operand.vmem [shape: f32[256,128], index: 1, kind: input, shape index: {}]   ;;  %s2206_s2 = inlined_call_operand.vmem [shape: f32[1,128], index: 2, kind: input, shape index: {}]   ;;  %s2207_s3 = inlined_call_operand.vmem [shape: f32[1,128], index: 3, kind: input, shape index: {}]   ;;  %s2208_s4 = inlined_call_operand.hbm [shape: f32[1,128], index: 4, kind: input, shape index: {}]   ;;  %s2209_s5 = inlined_call_operand.vmem [shape: f32[128,64], index: 5, kind: input, shape index: {}]   ;;  %s2210_s6 = inlined_call_operand.vmem [shape: f32[1,64], index: 6, kind: input, shape index: {}]   ;;  %s2211_s7 = inlined_call_operand.vmem [shape: f32[256,128], index: 7, kind: input, shape index: {}]   ;;  %s2212_s8 = inlined_call_operand.vmem [shape: f32[1,128], index: 8, kind: input, shape index: {}]   ;;  %s2213_s9 = inlined_call_operand.vmem [shape: f32[1,128], index: 9, kind: input, shape index: {}]   ;;  %s2214_s10 = inlined_call_operand.hbm [shape: f32[1,128], index: 10, kind: input, shape index: {}]   ;;  %s2215_s11 = inlined_call_operand.vmem [shape: f32[128,32], index: 11, kind: input, shape index: {}]   ;;  %s2216_s12 = inlined_call_operand.vmem [shape: f32[1,32], index: 12, kind: input, shape index: {}]   ;;  %s2217_s13 = inlined_call_operand.hbm [shape: f32[256,128], index: 13, kind: input, shape index: {}]   ;;  %s2218_s14 = inlined_call_operand.vmem [shape: f32[1,128], index: 14, kind: input, shape index: {}]   ;;  %s2219_s15 = inlined_call_operand.vmem [shape: f32[1,128], index: 15, kind: input, shape index: {}]   ;;  %s2220_s16 = inlined_call_operand.vmem [shape: f32[1,128], index: 16, kind: input, shape index: {}]   ;;  %s2221_s17 = inlined_call_operand.vmem [shape: f32[128,16], index: 17, kind: input, shape index: {}]   ;;  %s2222_s18 = inlined_call_operand.vmem [shape: f32[1,16], index: 18, kind: input, shape index: {}]   ;;  %s2223_s19 = inlined_call_operand.hbm [shape: f32[2,64], index: 19, kind: output, shape index: {0}]   ;;  %s2224_s20 = inlined_call_operand.hbm [shape: f32[2,32], index: 20, kind: output, shape index: {1}]   ;;  %s2225_s21 = inlined_call_operand.hbm [shape: f32[2,16], index: 21, kind: output, shape index: {2}]  }
   0x1   :  { %2230 = sst [smem:[#allocation19_spill]] %s2204_s0 }
   0x2   :  { %2231 = sst [smem:[#allocation20_spill]] %s2205_s1 }
   0x3   :  { %2232 = sst [smem:[#allocation21_spill]] %s2206_s2 }
   0x4   :  { %2233 = sst [smem:[#allocation22_spill]] %s2207_s3 }
   0x5   :  { %2234 = sst [smem:[#allocation23_spill]] %s2208_s4 }
   0x6   :  { %2235 = sst [smem:[#allocation24_spill]] %s2209_s5 }
   0x7   :  { %27 = vsyncpa [#allocation3], 0 }
   0x8   :  { %28 = vsyncpa [#allocation6], 0 }
   0x9   :  { %29 = vsyncpa [#allocation9], 0 }
   0xa   :  { %30 = vsyncpa [#allocation4], 0 }
   0xb   :  { %31 = vsyncpa [#allocation12], 0  ;;  %s1565_s2 = smov [#allocation5]   ;;  %s1566_s26 = smov [#allocation2]  }
   0xc   :  { %s54_s25 = sshll.u32 %s1565_s2, 4  ;;  %s38_s27 = sshll.u32 %s1566_s26, 4  ;;  %s55_s25 = int_to_ptr.vmem [resolvable:$true] %s54_s25  ;;  %s39_s27 = int_to_ptr.vmem [resolvable:$true] %s38_s27 }
   0xd   :  { %s2236_s29 = sld [smem:[#allocation23_spill]] }
  0x13   :  { %s1401_s0 = scalar_lea.hbm %s2236_s29, 16 }
  0x14   :  { %p1402_p0 = scmp.ne.s32.totalorder %s2236_s29, %s1401_s0  ;;  %p1405_p1 = scmp.lt.u32.totalorder %s1401_s0, %s2236_s29 }
  0x16   :  { %p1407_p2 = pnand %p1405_p1, %p1402_p0 }
  0x18   :  { %1410 = shalt.err (!%p1407_p2)
}
  0x19   :  { %s1411_s23 = scalar_lea.vmem %s55_s25, 16  ;;  %s1415_s1 = scalar_lea.vmem %s55_s25, 32 }
  0x1a   :  { %p1412_p3 = scmp.ne.s32.totalorder %s55_s25, %s1411_s23  ;;  %p1416_p4 = scmp.lt.s32.totalorder %s55_s25, %s55_s25 }
  0x1b   :  { %p1417_p5 = scmp.lt.s32.totalorder %s1415_s1, %s1411_s23 }
  0x1d   :  { %p1418_p6 = por %p1417_p5, %p1416_p4 }
  0x1f   :  { %p1419_p7 = pnand %p1418_p6, %p1412_p3 }
  0x21   :  { %1422 = shalt.err (!%p1419_p7)
}
  0x22   :  { %57 = dma.hbm_to_vmem [thread:$0]  %s2236_s29, 16, %s55_s25, [#allocation6]  }
  0x23   :  { %s2237_s28 = sld [smem:[#allocation19_spill]] }
  0x29   :  { %s1423_s4 = scalar_lea.hbm %s2237_s28, 64 }
  0x2a   :  { %p1424_p8 = scmp.ne.s32.totalorder %s2237_s28, %s1423_s4  ;;  %p1427_p9 = scmp.lt.u32.totalorder %s1423_s4, %s2237_s28 }
  0x2c   :  { %p1429_p10 = pnand %p1427_p9, %p1424_p8 }
  0x2e   :  { %1432 = shalt.err (!%p1429_p10)
}
  0x2f   :  { %s1433_s23 = scalar_lea.vmem %s39_s27, 64  ;;  %p1438_p12 = scmp.lt.s32.totalorder %s39_s27, %s39_s27 }
  0x30   :  { %p1434_p11 = scmp.ne.s32.totalorder %s39_s27, %s1433_s23  ;;  %p1439_p13 = scmp.lt.s32.totalorder %s1433_s23, %s1433_s23 }
  0x32   :  { %p1440_p0 = por %p1439_p13, %p1438_p12 }
  0x34   :  { %p1441_p1 = pnand %p1440_p0, %p1434_p11 }
  0x36   :  { %1444 = shalt.err (!%p1441_p1)
}
  0x37   :  { %41 = dma.hbm_to_vmem [thread:$0]  %s2237_s28, 64, %s39_s27, [#allocation3]  }
  0x38   :  { %s1567_s1 = smov [#allocation7]   ;;  %s1568_s2 = smov [#allocation8]  }
  0x39   :  { %s74_s24 = sshll.u32 %s1567_s1, 4  ;;  %s87_s26 = sshll.u32 %s1568_s2, 4  ;;  %s75_s24 = int_to_ptr.vmem [resolvable:$true] %s74_s24  ;;  %s1711_s26 = int_to_ptr.vmem [resolvable:$true] %s87_s26 }
  0x3a   :  { %s1445_s30 = scalar_lea.hbm %s2214_s10, 16 }
  0x3b   :  { %p1446_p2 = scmp.ne.s32.totalorder %s2214_s10, %s1445_s30  ;;  %p1449_p3 = scmp.lt.u32.totalorder %s1445_s30, %s2214_s10 }
  0x3d   :  { %p1451_p4 = pnand %p1449_p3, %p1446_p2 }
  0x3f   :  { %1454 = shalt.err (!%p1451_p4)
}
  0x40   :  { %s1455_s27 = scalar_lea.vmem %s75_s24, 16  ;;  %s1459_s28 = scalar_lea.vmem %s75_s24, 32 }
  0x41   :  { %p1456_p5 = scmp.ne.s32.totalorder %s75_s24, %s1455_s27  ;;  %p1460_p6 = scmp.lt.s32.totalorder %s75_s24, %s75_s24 }
  0x42   :  { %p1461_p7 = scmp.lt.s32.totalorder %s1459_s28, %s1455_s27 }
  0x44   :  { %p1462_p8 = por %p1461_p7, %p1460_p6 }
  0x46   :  { %p1463_p9 = pnand %p1462_p8, %p1456_p5 }
  0x48   :  { %1466 = shalt.err (!%p1463_p9)
}
  0x49   :  { %77 = dma.hbm_to_vmem [thread:$0]  %s2214_s10, 16, %s75_s24, [#allocation6]  }
  0x4a   :  { %s1467_s3 = scalar_lea.hbm %s2217_s13, 4096 }
  0x4b   :  { %p1468_p10 = scmp.ne.s32.totalorder %s2217_s13, %s1467_s3  ;;  %p1471_p11 = scmp.lt.u32.totalorder %s1467_s3, %s2217_s13 }
  0x4d   :  { %p1473_p12 = pnand %p1471_p11, %p1468_p10 }
  0x4f   :  { %1476 = shalt.err (!%p1473_p12)
}
  0x50   :  { %s1477_s22 = scalar_lea.vmem %s1711_s26, 4096  ;;  %p1482_p0 = scmp.lt.s32.totalorder %s1711_s26, %s1711_s26 }
  0x51   :  { %p1478_p13 = scmp.ne.s32.totalorder %s1711_s26, %s1477_s22  ;;  %p1483_p1 = scmp.lt.s32.totalorder %s1477_s22, %s1477_s22 }
  0x53   :  { %p1484_p2 = por %p1483_p1, %p1482_p0 }
  0x55   :  { %p1485_p3 = pnand %p1484_p2, %p1478_p13 }
  0x57   :  { %1488 = shalt.err (!%p1485_p3)
}
  0x58   :  { %s1569_s10 = smov 128   ;;  %s1570_s24 = smov 8  }
  0x59   :  { %93 = dma.hbm_to_vmem [thread:$0]  %s2217_s13, 4096, %s1711_s26, [#allocation9], %s1569_s10, %s1569_s10, %s1570_s24  }
  0x5a   :  { %1555 = dma.done.wait [#allocation3], 64  }
  0x5b   :  { %1556 = vsyncadd [#allocation3], 4294967232 }
  0x5c   :  { %1557 = dma.done.wait [#allocation6], 32  }
  0x5d   :  { %1558 = vsyncadd [#allocation6], 4294967264 }
  0x5e   :  { %1559 = dma.done.wait [#allocation9], 4096  }
  0x5f   :  { %1560 = vsyncadd [#allocation9], 4294963200  ;;  %s2238_s29 = sld [smem:[#allocation20_spill]]  ;;  %v397_v49 = vld [vmem:[%s2211_s7 + $0x80] sm:$0xff]  ;;  %v398_v50 = vld [vmem:[%s2211_s7 + $0x88] sm:$0xff]  ;;  %s2239_s24 = sld [smem:[#allocation24_spill]] }
  0x60   :  { %v1796_v25 = vld.sshfl [vmem:[#allocation2] sm:$0x33 pattern:$0x76325410]  ;;  %v1259_v52 = vpack.c.bf16 %v398_v50, %v397_v49  ;;  %v382_v54 = vld [vmem:[%s2211_s7 + $0x8] sm:$0xff]  ;;  %v399_v55 = vld [vmem:[%s2211_s7 + $0x90] sm:$0xff] }
  0x61   :  { %v1800_v26 = vcombine.high %v1796_v25, %v1796_v25  ;;  %v381_v53 = vld [vmem:[%s2211_s7] sm:$0xff]  ;;  %v400_v56 = vld [vmem:[%s2211_s7 + $0x98] sm:$0xff]  ;;  %v383_v59 = vld [vmem:[%s2211_s7 + $0x10] sm:$0xff]  ;;  %vm1572_vm0 = vmmov 0   ;;  %vm237_vm1 = vcmask 1041408   ;;  %s2241_s28 = sld [smem:[#allocation22_spill]] }
  0x62   :  { %v1261_v57 = vpack.c.bf16 %v382_v54, %v381_v53  ;;  %v1263_v58 = vpack.c.bf16 %v400_v56, %v399_v55  ;;  %v384_v60 = vld [vmem:[%s2211_s7 + $0x18] sm:$0xff]  ;;  %v401_v61 = vld [vmem:[%s2211_s7 + $0xa0] sm:$0xff]  ;;  %v402_v62 = vld [vmem:[%s2211_s7 + $0xa8] sm:$0xff]  ;;  %vm379_vm5 = vcmask 517120  }
  0x63   :  { %231 = vmatprep.mubr.f32.mxu0 %v1800_v26  ;;  %v1265_v63 = vpack.c.bf16 %v384_v60, %v383_v59  ;;  %v655_v53 = vld [vmem:[#allocation8 + $0xb0] sm:$0xff]  ;;  %v656_v54 = vld [vmem:[#allocation8 + $0xb8] sm:$0xff]  ;;  %v657_v59 = vld [vmem:[#allocation8 + $0xc0] sm:$0xff] }
  0x64   :  { %v1327_v56 = vpack.c.bf16 %v656_v54, %v655_v53  ;;  %v658_v60 = vld [vmem:[#allocation8 + $0xc8] sm:$0xff] }
  0x65   :  { %v133_v0 = vld [vmem:[%s2238_s29 + $0x80] sm:$0xff]  ;;  %v134_v1 = vld [vmem:[%s2238_s29 + $0x88] sm:$0xff]  ;;  %v135_v5 = vld [vmem:[%s2238_s29 + $0x90] sm:$0xff] }
  0x66   :  { %v117_v2 = vld [vmem:[%s2238_s29] sm:$0xff]  ;;  %v1203_v3 = vpack.c.bf16 %v134_v1, %v133_v0  ;;  %v118_v4 = vld [vmem:[%s2238_s29 + $0x8] sm:$0xff]  ;;  %v136_v6 = vld [vmem:[%s2238_s29 + $0x98] sm:$0xff]  ;;  %v1267_v0 = vpack.c.bf16 %v402_v62, %v401_v61  ;;  %v1331_v62 = vpack.c.bf16 %v658_v60, %v657_v59 }
  0x67   :  { %v1205_v7 = vpack.c.bf16 %v118_v4, %v117_v2  ;;  %v1207_v8 = vpack.c.bf16 %v136_v6, %v135_v5  ;;  %v119_v9 = vld [vmem:[%s2238_s29 + $0x10] sm:$0xff]  ;;  %v120_v10 = vld [vmem:[%s2238_s29 + $0x18] sm:$0xff]  ;;  %v137_v11 = vld [vmem:[%s2238_s29 + $0xa0] sm:$0xff] }
  0x68   :  { %1204 = vmatprep.subr.bf16.mxu0 %v1203_v3  ;;  %v138_v12 = vld [vmem:[%s2238_s29 + $0xa8] sm:$0xff]  ;;  %v1209_v13 = vpack.c.bf16 %v120_v10, %v119_v9  ;;  %v121_v15 = vld [vmem:[%s2238_s29 + $0x20] sm:$0xff]  ;;  %v139_v17 = vld [vmem:[%s2238_s29 + $0xb0] sm:$0xff] }
  0x69   :  { %1206 = vmatpush3.bf16.msra.mxu0 %v1205_v7  ;;  %v1211_v14 = vpack.c.bf16 %v138_v12, %v137_v11  ;;  %v122_v16 = vld [vmem:[%s2238_s29 + $0x28] sm:$0xff]  ;;  %v140_v18 = vld [vmem:[%s2238_s29 + $0xb8] sm:$0xff]  ;;  %v123_v21 = vld [vmem:[%s2238_s29 + $0x30] sm:$0xff] }
  0x6a   :  { %1208 = vmatprep.subr.bf16.mxu0 %v1207_v8  ;;  %v1213_v19 = vpack.c.bf16 %v122_v16, %v121_v15  ;;  %v1215_v20 = vpack.c.bf16 %v140_v18, %v139_v17  ;;  %v124_v22 = vld [vmem:[%s2238_s29 + $0x38] sm:$0xff]  ;;  %v141_v23 = vld [vmem:[%s2238_s29 + $0xc0] sm:$0xff]  ;;  %v142_v24 = vld [vmem:[%s2238_s29 + $0xc8] sm:$0xff] }
  0x6b   :  { %v1217_v27 = vpack.c.bf16 %v124_v22, %v123_v21  ;;  %v1219_v28 = vpack.c.bf16 %v142_v24, %v141_v23  ;;  %v125_v29 = vld [vmem:[%s2238_s29 + $0x40] sm:$0xff]  ;;  %v126_v30 = vld [vmem:[%s2238_s29 + $0x48] sm:$0xff]  ;;  %v143_v31 = vld [vmem:[%s2238_s29 + $0xd0] sm:$0xff] }
  0x6c   :  { %v144_v32 = vld [vmem:[%s2238_s29 + $0xd8] sm:$0xff]  ;;  %v1221_v33 = vpack.c.bf16 %v126_v30, %v125_v29  ;;  %v127_v35 = vld [vmem:[%s2238_s29 + $0x50] sm:$0xff]  ;;  %v145_v37 = vld [vmem:[%s2238_s29 + $0xe0] sm:$0xff] }
  0x6d   :  { %1210 = vmatpush3.bf16.msra.mxu0 %v1209_v13  ;;  %v1223_v34 = vpack.c.bf16 %v144_v32, %v143_v31  ;;  %v128_v36 = vld [vmem:[%s2238_s29 + $0x58] sm:$0xff]  ;;  %v146_v38 = vld [vmem:[%s2238_s29 + $0xe8] sm:$0xff]  ;;  %v129_v41 = vld [vmem:[%s2238_s29 + $0x60] sm:$0xff] }
  0x6e   :  { %1212 = vmatprep.subr.bf16.mxu0 %v1211_v14  ;;  %v1225_v39 = vpack.c.bf16 %v128_v36, %v127_v35  ;;  %v1227_v40 = vpack.c.bf16 %v146_v38, %v145_v37  ;;  %v130_v42 = vld [vmem:[%s2238_s29 + $0x68] sm:$0xff]  ;;  %v147_v43 = vld [vmem:[%s2238_s29 + $0xf0] sm:$0xff]  ;;  %v148_v44 = vld [vmem:[%s2238_s29 + $0xf8] sm:$0xff] }
  0x6f   :  { %v1229_v45 = vpack.c.bf16 %v130_v42, %v129_v41  ;;  %v1231_v46 = vpack.c.bf16 %v148_v44, %v147_v43  ;;  %v131_v47 = vld [vmem:[%s2238_s29 + $0x70] sm:$0xff]  ;;  %v132_v48 = vld [vmem:[%s2238_s29 + $0x78] sm:$0xff]  ;;  %v385_v1 = vld [vmem:[%s2211_s7 + $0x20] sm:$0xff] }
  0x70   :  { %v1233_v51 = vpack.c.bf16 %v132_v48, %v131_v47  ;;  %v386_v2 = vld [vmem:[%s2211_s7 + $0x28] sm:$0xff]  ;;  %v403_v3 = vld [vmem:[%s2211_s7 + $0xb0] sm:$0xff]  ;;  %v404_v4 = vld [vmem:[%s2211_s7 + $0xb8] sm:$0xff] }
  0x71   :  { %1214 = vmatpush3.bf16.msra.mxu0 %v1213_v19  ;;  %v1269_v5 = vpack.c.bf16 %v386_v2, %v385_v1  ;;  %v1271_v6 = vpack.c.bf16 %v404_v4, %v403_v3  ;;  %v387_v7 = vld [vmem:[%s2211_s7 + $0x30] sm:$0xff]  ;;  %v388_v8 = vld [vmem:[%s2211_s7 + $0x38] sm:$0xff]  ;;  %v405_v9 = vld [vmem:[%s2211_s7 + $0xc0] sm:$0xff] }
  0x72   :  { %1216 = vmatprep.subr.bf16.mxu0 %v1215_v20  ;;  %v406_v10 = vld [vmem:[%s2211_s7 + $0xc8] sm:$0xff]  ;;  %v1273_v11 = vpack.c.bf16 %v388_v8, %v387_v7  ;;  %v389_v13 = vld [vmem:[%s2211_s7 + $0x40] sm:$0xff]  ;;  %v407_v15 = vld [vmem:[%s2211_s7 + $0xd0] sm:$0xff] }
  0x73   :  { %v1275_v12 = vpack.c.bf16 %v406_v10, %v405_v9  ;;  %v390_v14 = vld [vmem:[%s2211_s7 + $0x48] sm:$0xff]  ;;  %v408_v16 = vld [vmem:[%s2211_s7 + $0xd8] sm:$0xff]  ;;  %v391_v19 = vld [vmem:[%s2211_s7 + $0x50] sm:$0xff] }
  0x74   :  { %v1277_v17 = vpack.c.bf16 %v390_v14, %v389_v13  ;;  %v1279_v18 = vpack.c.bf16 %v408_v16, %v407_v15  ;;  %v392_v20 = vld [vmem:[%s2211_s7 + $0x58] sm:$0xff]  ;;  %v409_v21 = vld [vmem:[%s2211_s7 + $0xe0] sm:$0xff]  ;;  %v410_v22 = vld [vmem:[%s2211_s7 + $0xe8] sm:$0xff] }
  0x75   :  { %1218 = vmatpush3.bf16.msra.mxu0 %v1217_v27  ;;  %v1281_v23 = vpack.c.bf16 %v392_v20, %v391_v19  ;;  %v1283_v24 = vpack.c.bf16 %v410_v22, %v409_v21  ;;  %v393_v27 = vld [vmem:[%s2211_s7 + $0x60] sm:$0xff]  ;;  %v411_v29 = vld [vmem:[%s2211_s7 + $0xf0] sm:$0xff]  ;;  %v412_v30 = vld [vmem:[%s2211_s7 + $0xf8] sm:$0xff]  ;;  %v1571_v22 = vmov 0.0|0.0  }
  0x76   :  { %1220 = vmatprep.subr.bf16.mxu0 %v1219_v28  ;;  %v394_v28 = vld [vmem:[%s2211_s7 + $0x68] sm:$0xff]  ;;  %v1287_v32 = vpack.c.bf16 %v412_v30, %v411_v29  ;;  %v650_v36 = vld [vmem:[#allocation8 + $0x88] sm:$0xff]  ;;  %v651_v41 = vld [vmem:[#allocation8 + $0x90] sm:$0xff]  ;;  %1235 = vmatprep.subr.bf16.mxu1 %v1571_v22 }
  0x77   :  { %v1285_v31 = vpack.c.bf16 %v394_v28, %v393_v27  ;;  %v649_v35 = vld [vmem:[#allocation8 + $0x80] sm:$0xff]  ;;  %v652_v42 = vld [vmem:[#allocation8 + $0x98] sm:$0xff]  ;;  %v654_v48 = vld [vmem:[#allocation8 + $0xa8] sm:$0xff] }
  0x78   :  { %v1315_v38 = vpack.c.bf16 %v650_v36, %v649_v35  ;;  %v1319_v44 = vpack.c.bf16 %v652_v42, %v651_v41  ;;  %v653_v47 = vld [vmem:[#allocation8 + $0xa0] sm:$0xff]  ;;  %v660_v1 = vld [vmem:[#allocation8 + $0xd8] sm:$0xff]  ;;  %v643_v4 = vld [vmem:[#allocation8 + $0x50] sm:$0xff] }
  0x79   :  { %1222 = vmatpush3.bf16.msra.mxu0 %v1221_v33  ;;  %v395_v33 = vld [vmem:[%s2211_s7 + $0x70] sm:$0xff]  ;;  %v1323_v50 = vpack.c.bf16 %v654_v48, %v653_v47  ;;  %v645_v10 = vld [vmem:[#allocation8 + $0x60] sm:$0xff]  ;;  %v664_v13 = vld [vmem:[#allocation8 + $0xf8] sm:$0xff] }
  0x7a   :  { %1224 = vmatprep.subr.bf16.mxu0 %v1223_v34  ;;  %v396_v34 = vld [vmem:[%s2211_s7 + $0x78] sm:$0xff]  ;;  %v662_v7 = vld [vmem:[#allocation8 + $0xe8] sm:$0xff]  ;;  %v280_v19 = vld [vmem:[%s2239_s24] sm:$0xff]  ;;  %s2240_s7 = sld [smem:[#allocation21_spill]] }
  0x7b   :  { %v1289_v37 = vpack.c.bf16 %v396_v34, %v395_v33  ;;  %v647_v16 = vld [vmem:[#allocation8 + $0x70] sm:$0xff]  ;;  %v281_v20 = vld [vmem:[%s2239_s24 + $0x8] sm:$0xff]  ;;  %v284_v27 = vld [vmem:[%s2239_s24 + $0x20] sm:$0xff] }
  0x7c   :  { %v1236_v21 = vpack.c.bf16 %v281_v20, %v280_v19  ;;  %v285_v28 = vld [vmem:[%s2239_s24 + $0x28] sm:$0xff]  ;;  %v286_v30 = vld [vmem:[%s2239_s24 + $0x30] sm:$0xff]  ;;  %v288_v33 = vld [vmem:[%s2239_s24 + $0x40] sm:$0xff] }
  0x7d   :  { %1226 = vmatpush3.bf16.msra.mxu0 %v1225_v39  ;;  %v633_v39 = vld [vmem:[#allocation8] sm:$0xff]  ;;  %v1242_v29 = vpack.c.bf16 %v285_v28, %v284_v27  ;;  %v290_v36 = vld [vmem:[%s2239_s24 + $0x50] sm:$0xff] }
  0x7e   :  { %1228 = vmatprep.subr.bf16.mxu0 %v1227_v40  ;;  %v634_v40 = vld [vmem:[#allocation8 + $0x8] sm:$0xff]  ;;  %1237 = vmatpush3.bf16.msra.mxu1 %v1236_v21  ;;  %v289_v34 = vld [vmem:[%s2239_s24 + $0x48] sm:$0xff] }
  0x7f   :  { %v1317_v43 = vpack.c.bf16 %v634_v40, %v633_v39  ;;  %1238 = vmatprep.subr.bf16.mxu1 %v1571_v22  ;;  %v1248_v35 = vpack.c.bf16 %v289_v34, %v288_v33  ;;  %v292_v39 = vld [vmem:[%s2239_s24 + $0x60] sm:$0xff]  ;;  %v293_v40 = vld [vmem:[%s2239_s24 + $0x68] sm:$0xff]  ;;  %v294_v42 = vld [vmem:[%s2239_s24 + $0x70] sm:$0xff] }
  0x80   :  { %v1254_v41 = vpack.c.bf16 %v293_v40, %v292_v39  ;;  %v929_v47 = vld [vmem:[%s2240_s7] ss:$0 sm:$0xff]  ;;  %v534_v34 = vld [vmem:[%s2215_s11 + $0x10] sm:$0xff] }
  0x81   :  { %1230 = vmatpush3.bf16.msra.mxu0 %v1229_v45  ;;  %v635_v45 = vld [vmem:[#allocation8 + $0x10] sm:$0xff] }
  0x82   :  { %1232 = vmatprep.subr.bf16.mxu0 %v1231_v46  ;;  %v636_v46 = vld [vmem:[#allocation8 + $0x18] sm:$0xff] }
  0x83   :  { %v1321_v49 = vpack.c.bf16 %v636_v46, %v635_v45  ;;  %v1573_v45 = vmov 0.0  }
  0x84   :  { %1130 = vmatprep.mubr.msk.f32.mxu1 %vm1572_vm0, %v1573_v45 }
  0x85   :  { %1234 = vmatpush3.bf16.msra.mxu0 %v1233_v51  ;;  %v637_v51 = vld [vmem:[#allocation8 + $0x20] sm:$0xff] }
  0x86   :  { %1260 = vmatprep.subr.bf16.mxu0 %v1259_v52  ;;  %v638_v52 = vld [vmem:[#allocation8 + $0x28] sm:$0xff] }
  0x87   :  { %v1325_v55 = vpack.c.bf16 %v638_v52, %v637_v51 }
  0x88   :  { %232 = vmatmul.mubr.f32.vlgmr.msra.gmra.mrb[0].mxu0 %v1796_v25 }
  0x89   :  { %1262 = vmatpush3.bf16.msra.mxu0 %v1261_v57  ;;  %484 = vmatprep.mubr.f32.mxu0 %v1800_v26  ;;  %v639_v57 = vld [vmem:[#allocation8 + $0x30] sm:$0xff] }
  0x8a   :  { %1264 = vmatprep.subr.bf16.mxu0 %v1263_v58  ;;  %v640_v58 = vld [vmem:[#allocation8 + $0x38] sm:$0xff] }
  0x8b   :  { %v1329_v61 = vpack.c.bf16 %v640_v58, %v639_v57 }
  0x8d   :  { %1266 = vmatpush3.bf16.msra.mxu0 %v1265_v63  ;;  %v641_v63 = vld [vmem:[#allocation8 + $0x40] sm:$0xff] }
  0x8e   :  { %1268 = vmatprep.subr.bf16.mxu0 %v1267_v0  ;;  %v659_v0 = vld [vmem:[#allocation8 + $0xd0] sm:$0xff] }
  0x8f   :  { %v1335_v3 = vpack.c.bf16 %v660_v1, %v659_v0 }
  0x91   :  { %1270 = vmatpush3.bf16.msra.mxu0 %v1269_v5  ;;  %v644_v5 = vld [vmem:[#allocation8 + $0x58] sm:$0xff] }
  0x92   :  { %1272 = vmatprep.subr.bf16.mxu0 %v1271_v6  ;;  %v661_v6 = vld [vmem:[#allocation8 + $0xe0] sm:$0xff]  ;;  %v1337_v8 = vpack.c.bf16 %v644_v5, %v643_v4 }
  0x93   :  { %v1339_v9 = vpack.c.bf16 %v662_v7, %v661_v6  ;;  %v934_v7 = vld [vmem:[%s2212_s8] ss:$0 sm:$0xff] }
  0x95   :  { %1274 = vmatpush3.bf16.msra.mxu0 %v1273_v11  ;;  %v646_v11 = vld [vmem:[#allocation8 + $0x68] sm:$0xff] }
  0x96   :  { %1276 = vmatprep.subr.bf16.mxu0 %v1275_v12  ;;  %v663_v12 = vld [vmem:[#allocation8 + $0xf0] sm:$0xff]  ;;  %v1341_v14 = vpack.c.bf16 %v646_v11, %v645_v10 }
  0x97   :  { %v1343_v15 = vpack.c.bf16 %v664_v13, %v663_v12  ;;  %v931_v13 = vld [vmem:[%s2241_s28] ss:$0 sm:$0xff] }
  0x99   :  { %1278 = vmatpush3.bf16.msra.mxu0 %v1277_v17  ;;  %v648_v17 = vld [vmem:[#allocation8 + $0x78] sm:$0xff] }
  0x9a   :  { %1280 = vmatprep.subr.bf16.mxu0 %v1279_v18  ;;  %v1345_v18 = vpack.c.bf16 %v648_v17, %v647_v16 }
  0x9d   :  { %1282 = vmatpush3.bf16.msra.mxu0 %v1281_v23  ;;  %v282_v23 = vld [vmem:[%s2239_s24 + $0x10] sm:$0xff] }
  0x9e   :  { %1284 = vmatprep.subr.bf16.mxu0 %v1283_v24 }
  0xa1   :  { %1286 = vmatpush3.bf16.msra.mxu0 %v1285_v31  ;;  %v287_v31 = vld [vmem:[%s2239_s24 + $0x38] sm:$0xff] }
  0xa2   :  { %1288 = vmatprep.subr.bf16.mxu0 %v1287_v32  ;;  %v1245_v32 = vpack.c.bf16 %v287_v31, %v286_v30 }
  0xa5   :  { %1290 = vmatpush3.bf16.msra.mxu0 %v1289_v37  ;;  %v291_v37 = vld [vmem:[%s2239_s24 + $0x58] sm:$0xff] }
  0xa6   :  { %1316 = vmatprep.subr.bf16.mxu0 %v1315_v38  ;;  %v1251_v38 = vpack.c.bf16 %v291_v37, %v290_v36 }
  0xa8   :  { %485 = vmatmul.mubr.f32.vlgmr.msra.gmra.mrb[2].mxu0 %v1796_v25 }
  0xa9   :  { %1318 = vmatpush3.bf16.msra.mxu0 %v1317_v43  ;;  %736 = vmatprep.mubr.f32.mxu0 %v1800_v26  ;;  %v642_v26 = vld [vmem:[#allocation8 + $0x48] sm:$0xff]  ;;  %v295_v43 = vld [vmem:[%s2239_s24 + $0x78] sm:$0xff] }
  0xaa   :  { %1320 = vmatprep.subr.bf16.mxu0 %v1319_v44  ;;  %v1333_v2 = vpack.c.bf16 %v642_v26, %v641_v63  ;;  %v1257_v44 = vpack.c.bf16 %v295_v43, %v294_v42  ;;  %v536_v42 = vld [vmem:[%s2215_s11 + $0x20] sm:$0xff]  ;;  %v537_v43 = vld [vmem:[%s2215_s11 + $0x28] sm:$0xff] }
  0xad   :  { %1322 = vmatpush3.bf16.msra.mxu0 %v1321_v49 }
  0xae   :  { %1324 = vmatprep.subr.bf16.mxu0 %v1323_v50 }
  0xb1   :  { %1326 = vmatpush3.bf16.msra.mxu0 %v1325_v55 }
  0xb2   :  { %1328 = vmatprep.subr.bf16.mxu0 %v1327_v56 }
  0xb5   :  { %1330 = vmatpush3.bf16.msra.mxu0 %v1329_v61 }
  0xb6   :  { %1332 = vmatprep.subr.bf16.mxu0 %v1331_v62 }
  0xb9   :  { %1334 = vmatpush3.bf16.msra.mxu0 %v1333_v2 }
  0xba   :  { %1336 = vmatprep.subr.bf16.mxu0 %v1335_v3 }
  0xbd   :  { %1338 = vmatpush3.bf16.msra.mxu0 %v1337_v8 }
  0xbe   :  { %1340 = vmatprep.subr.bf16.mxu0 %v1339_v9 }
  0xc1   :  { %1342 = vmatpush3.bf16.msra.mxu0 %v1341_v14 }
  0xc2   :  { %1344 = vmatprep.subr.bf16.mxu0 %v1343_v15 }
  0xc5   :  { %1346 = vmatpush3.bf16.msra.mxu0 %v1345_v18  ;;  %v932_v18 = vld [vmem:[#allocation5] ss:$0 sm:$0xff] }
  0xc8   :  { %737 = vmatmul.mubr.f32.vlgmr.msra.gmra.mrb[4].mxu0 %v1796_v25  ;;  %v283_v25 = vld [vmem:[%s2239_s24 + $0x18] sm:$0xff] }
  0xc9   :  { %v1239_v24 = vpack.c.bf16 %v283_v25, %v282_v23  ;;  %v532_v25 = vld [vmem:[%s2215_s11] sm:$0xff] }
  0xcb   :  { %1240 = vmatpush3.bf16.msra.mxu1 %v1239_v24  ;;  %v533_v24 = vld [vmem:[%s2215_s11 + $0x8] sm:$0xff] }
  0xcc   :  { %1241 = vmatprep.subr.bf16.mxu1 %v1571_v22  ;;  %v1292_v31 = vpack.c.bf16 %v533_v24, %v532_v25 }
  0xcf   :  { %1243 = vmatpush3.bf16.msra.mxu1 %v1242_v29 }
  0xd0   :  { %1244 = vmatprep.subr.bf16.mxu1 %v1571_v22 }
  0xd3   :  { %1246 = vmatpush3.bf16.msra.mxu1 %v1245_v32 }
  0xd4   :  { %1247 = vmatprep.subr.bf16.mxu1 %v1571_v22 }
  0xd7   :  { %1249 = vmatpush3.bf16.msra.mxu1 %v1248_v35  ;;  %v535_v35 = vld [vmem:[%s2215_s11 + $0x18] sm:$0xff] }
  0xd8   :  { %1250 = vmatprep.subr.bf16.mxu1 %v1571_v22  ;;  %v1295_v39 = vpack.c.bf16 %v535_v35, %v534_v34 }
  0xdb   :  { %1252 = vmatpush3.bf16.msra.mxu1 %v1251_v38 }
  0xdc   :  { %1253 = vmatprep.subr.bf16.mxu1 %v1571_v22 }
  0xdf   :  { %1255 = vmatpush3.bf16.msra.mxu1 %v1254_v41 }
  0xe0   :  { %1256 = vmatprep.subr.bf16.mxu1 %v1571_v22 }
  0xe3   :  { %1258 = vmatpush3.bf16.msra.mxu1 %v1257_v44 }
  0xe4   :  { %1291 = vmatprep.subr.bf16.mxu1 %v1571_v22 }
 0x15b   :  { %v974_v46 = vpop.f32.mrb[0].mxu0 }
 0x15c   :  { %v975_v48 = vpop.f32.mrb[1].mxu0 }
 0x15d   :  { %v976_v49 = vadd.f32 %v975_v48, %v974_v46 }
 0x15f   :  { %v234_v50 = vadd.f32 %v976_v49, %v929_v47  ;;  %v1298_v47 = vpack.c.bf16 %v537_v43, %v536_v42 }
 0x161   :  { %v238_v51 = vsel %vm237_vm1, %v234_v50, 0.0  ;;  %v246_v52 = vmul.f32 %v234_v50, %v234_v50 }
 0x162   :  { %v239_v53 = vrot.slane %v238_v51, 4 }
 0x163   :  { %v247_v54 = vsel %vm237_vm1, %v246_v52, 0.0 }
 0x164   :  { %v240_v55 = vadd.f32 %v239_v53, %v238_v51  ;;  %v248_v56 = vrot.slane %v247_v54, 4  ;;  %v539_v51 = vld [vmem:[%s2215_s11 + $0x38] sm:$0xff] }
 0x166   :  { %v241_v57 = vrot.slane %v240_v55, 2  ;;  %v249_v58 = vadd.f32 %v248_v56, %v247_v54  ;;  %v541_v56 = vld [vmem:[%s2215_s11 + $0x48] sm:$0xff] }
 0x168   :  { %v242_v59 = vadd.f32 %v241_v57, %v240_v55  ;;  %v250_v60 = vrot.slane %v249_v58, 2  ;;  %v540_v55 = vld [vmem:[%s2215_s11 + $0x40] sm:$0xff] }
 0x169   :  { %v1304_v57 = vpack.c.bf16 %v541_v56, %v540_v55  ;;  %v796_v56 = vld [vmem:[%s2221_s17 + $0x60] sm:$0xff] }
 0x16a   :  { %v243_v61 = vrot.slane %v242_v59, 1  ;;  %v251_v62 = vadd.f32 %v250_v60, %v249_v58  ;;  %v542_v58 = vld [vmem:[%s2215_s11 + $0x50] sm:$0xff] }
 0x16c   :  { %v244_v63 = vadd.f32 %v243_v61, %v242_v59  ;;  %v252_v26 = vrot.slane %v251_v62, 1  ;;  %v543_v59 = vld [vmem:[%s2215_s11 + $0x58] sm:$0xff] }
 0x16d   :  { %v1307_v61 = vpack.c.bf16 %v543_v59, %v542_v58 }
 0x16e   :  { %v245_v0 = vmul.f32 0.5, %v244_v63  ;;  %v253_v1 = vadd.f32 %v252_v26, %v251_v62  ;;  %v938_v62 = vld [vmem:[%s2218_s14] ss:$0 sm:$0xff] }
 0x16f   :  { %v544_v26 = vld [vmem:[%s2215_s11 + $0x60] sm:$0xff] }
 0x170   :  { %v254_v2 = vmul.f32 0.5, %v253_v1  ;;  %v255_v3 = vmul.f32 %v245_v0, %v245_v0  ;;  %v257_v10 = vsub.f32 %v234_v50, %v245_v0  ;;  %v538_v50 = vld [vmem:[%s2215_s11 + $0x30] sm:$0xff]  ;;  %v545_v0 = vld [vmem:[%s2215_s11 + $0x68] sm:$0xff] }
 0x171   :  { %v1301_v53 = vpack.c.bf16 %v539_v51, %v538_v50  ;;  %v792_v50 = vld [vmem:[%s2221_s17 + $0x40] sm:$0xff]  ;;  %v793_v51 = vld [vmem:[%s2221_s17 + $0x48] sm:$0xff] }
 0x172   :  { %v256_v4 = vsub.f32 %v254_v2, %v255_v3 }
 0x174   :  { %v258_v5 = vadd.f32 1e-05, %v256_v4  ;;  %v1310_v4 = vpack.c.bf16 %v545_v0, %v544_v26  ;;  %v940_v0 = vld [vmem:[%s2220_s16] ss:$0 sm:$0xff] }
 0x176   :  { %1383 = vrsqrt.f32 %v258_v5 }
 0x17b   :  { %v1026_v6 = vpop.f32.mrb[2].mxu0 }
 0x17c   :  { %v1027_v8 = vpop.f32.mrb[3].mxu0 }
 0x17d   :  { %v1028_v9 = vadd.f32 %v1027_v8, %v1026_v6  ;;  %v546_v6 = vld [vmem:[%s2215_s11 + $0x70] sm:$0xff]  ;;  %v935_v8 = vld [vmem:[%s2213_s9] ss:$0 sm:$0xff] }
 0x17f   :  { %v2013_v11 = vadd.f32 %v1028_v9, %v934_v7  ;;  %v547_v7 = vld [vmem:[%s2215_s11 + $0x78] sm:$0xff] }
 0x180   :  { %v1384_v12 = vpop.eup %1383 }
 0x181   :  { %v260_v14 = vmul.f32 %v1384_v12, %v257_v10  ;;  %v490_v15 = vsel %vm237_vm1, %v2013_v11, 0.0  ;;  %v498_v16 = vmul.f32 %v2013_v11, %v2013_v11 }
 0x182   :  { %v491_v17 = vrot.slane %v490_v15, 4 }
 0x183   :  { %v499_v19 = vsel %vm237_vm1, %v498_v16, 0.0  ;;  %v268_v20 = vmul.f32 %v931_v13, %v260_v14  ;;  %v936_v13 = vld [vmem:[#allocation7] ss:$0 sm:$0xff] }
 0x184   :  { %v492_v21 = vadd.f32 %v491_v17, %v490_v15  ;;  %v500_v23 = vrot.slane %v499_v19, 4  ;;  %v1313_v15 = vpack.c.bf16 %v547_v7, %v546_v6  ;;  %v933_v6 = vld [vmem:[%s2210_s6] ss:$0 sm:$0xff] }
 0x185   :  { %v276_v27 = vadd.f32 %v932_v18, %v268_v20  ;;  %v785_v20 = vld [vmem:[%s2221_s17 + $0x8] sm:$0xff] }
 0x186   :  { %v493_v28 = vrot.slane %v492_v21, 2  ;;  %v501_v29 = vadd.f32 %v500_v23, %v499_v19  ;;  %v784_v19 = vld [vmem:[%s2221_s17] sm:$0xff] }
 0x187   :  { %vm277_vm2 = vcmp.ge.f32.partialorder %v276_v27, 0.0  ;;  %v278_v30 = vmul.f32 0.2, %v276_v27 }
 0x188   :  { %v494_v32 = vadd.f32 %v493_v28, %v492_v21  ;;  %v502_v33 = vrot.slane %v501_v29, 2 }
 0x189   :  { %v279_v36 = vsel %vm277_vm2, %v276_v27, %v278_v30  ;;  %v1348_v27 = vpack.c.bf16 %v785_v20, %v784_v19  ;;  %v786_v30 = vld [vmem:[%s2221_s17 + $0x10] sm:$0xff] }
 0x18a   :  { %v495_v37 = vrot.slane %v494_v32, 1  ;;  %v503_v38 = vadd.f32 %v502_v33, %v501_v29  ;;  %1131 = vmatmul.mubr.f32.vlgmr.msra.gmra.mrb[0].mxu1 %v279_v36 }
 0x18b   :  { %1293 = vmatpush3.bf16.msra.mxu1 %v1292_v31  ;;  %1165 = vmatprep.mubr.msk.f32.mxu1 %vm1572_vm0, %v1573_v45  ;;  %v787_v31 = vld [vmem:[%s2221_s17 + $0x18] sm:$0xff] }
 0x18c   :  { %v496_v40 = vadd.f32 %v495_v37, %v494_v32  ;;  %v504_v41 = vrot.slane %v503_v38, 1  ;;  %1294 = vmatprep.subr.bf16.mxu1 %v1571_v22  ;;  %v1351_v35 = vpack.c.bf16 %v787_v31, %v786_v30 }
 0x18e   :  { %v497_v44 = vmul.f32 0.5, %v496_v40  ;;  %v505_v46 = vadd.f32 %v504_v41, %v503_v38  ;;  %v788_v38 = vld [vmem:[%s2221_s17 + $0x20] sm:$0xff] }
 0x18f   :  { %1296 = vmatpush3.bf16.msra.mxu1 %v1295_v39  ;;  %v789_v39 = vld [vmem:[%s2221_s17 + $0x28] sm:$0xff] }
 0x190   :  { %v506_v48 = vmul.f32 0.5, %v505_v46  ;;  %v507_v49 = vmul.f32 %v497_v44, %v497_v44  ;;  %1297 = vmatprep.subr.bf16.mxu1 %v1571_v22  ;;  %v509_v2 = vsub.f32 %v2013_v11, %v497_v44  ;;  %v1354_v42 = vpack.c.bf16 %v789_v39, %v788_v38  ;;  %v791_v46 = vld [vmem:[%s2221_s17 + $0x38] sm:$0xff] }
 0x192   :  { %v508_v52 = vsub.f32 %v506_v48, %v507_v49 }
 0x193   :  { %1299 = vmatpush3.bf16.msra.mxu1 %v1298_v47 }
 0x194   :  { %v510_v54 = vadd.f32 1e-05, %v508_v52  ;;  %1300 = vmatprep.subr.bf16.mxu1 %v1571_v22  ;;  %v1360_v52 = vpack.c.bf16 %v793_v51, %v792_v50 }
 0x196   :  { %1385 = vrsqrt.f32 %v510_v54  ;;  %v795_v54 = vld [vmem:[%s2221_s17 + $0x58] sm:$0xff] }
 0x197   :  { %1302 = vmatpush3.bf16.msra.mxu1 %v1301_v53  ;;  %v794_v53 = vld [vmem:[%s2221_s17 + $0x50] sm:$0xff] }
 0x198   :  { %1303 = vmatprep.subr.bf16.mxu1 %v1571_v22  ;;  %v1363_v55 = vpack.c.bf16 %v795_v54, %v794_v53 }
 0x19b   :  { %1305 = vmatpush3.bf16.msra.mxu1 %v1304_v57  ;;  %v1078_v60 = vpop.f32.mrb[4].mxu0  ;;  %v797_v57 = vld [vmem:[%s2221_s17 + $0x68] sm:$0xff] }
 0x19c   :  { %v1079_v63 = vpop.f32.mrb[5].mxu0  ;;  %1306 = vmatprep.subr.bf16.mxu1 %v1571_v22  ;;  %v1366_v59 = vpack.c.bf16 %v797_v57, %v796_v56 }
 0x19d   :  { %v1080_v1 = vadd.f32 %v1079_v63, %v1078_v60  ;;  %v939_v63 = vld [vmem:[%s2219_s15] ss:$0 sm:$0xff]  ;;  %s1574_s15 = smov [#allocation10]  }
 0x19e   :  { %s891_s16 = sshll.u32 %s1574_s15, 4  ;;  %s892_s16 = int_to_ptr.vmem [resolvable:$true] %s891_s16 }
 0x19f   :  { %v2076_v3 = vadd.f32 %v1080_v1, %v938_v62  ;;  %1308 = vmatpush3.bf16.msra.mxu1 %v1307_v61  ;;  %v798_v61 = vld [vmem:[%s2221_s17 + $0x70] sm:$0xff]  ;;  %v799_v62 = vld [vmem:[%s2221_s17 + $0x78] sm:$0xff]  ;;  %s1489_s6 = scalar_lea.vmem %s892_s16, 32  ;;  %p1494_p5 = scmp.lt.s32.totalorder %s892_s16, %s892_s16 }
 0x1a0   :  { %v1386_v5 = vpop.eup %1385  ;;  %1309 = vmatprep.subr.bf16.mxu1 %v1571_v22  ;;  %v1369_v1 = vpack.c.bf16 %v799_v62, %v798_v61  ;;  %p1490_p4 = scmp.ne.s32.totalorder %s892_s16, %s1489_s6  ;;  %p1495_p6 = scmp.lt.s32.totalorder %s1489_s6, %s1489_s6 }
 0x1a1   :  { %v512_v9 = vmul.f32 %v1386_v5, %v509_v2  ;;  %v742_v10 = vsel %vm237_vm1, %v2076_v3, 0.0  ;;  %v750_v11 = vmul.f32 %v2076_v3, %v2076_v3 }
 0x1a2   :  { %v743_v12 = vrot.slane %v742_v10, 4  ;;  %p1496_p7 = por %p1495_p6, %p1494_p5 }
 0x1a3   :  { %v751_v14 = vsel %vm237_vm1, %v750_v11, 0.0  ;;  %1311 = vmatpush3.bf16.msra.mxu1 %v1310_v4  ;;  %v520_v16 = vmul.f32 %v935_v8, %v512_v9 }
 0x1a4   :  { %v744_v17 = vadd.f32 %v743_v12, %v742_v10  ;;  %v752_v18 = vrot.slane %v751_v14, 4  ;;  %1312 = vmatprep.subr.bf16.mxu1 %v1571_v22  ;;  %p1497_p8 = pnand %p1496_p7, %p1490_p4 }
 0x1a5   :  { %v528_v21 = vadd.f32 %v936_v13, %v520_v16 }
 0x1a6   :  { %v745_v23 = vrot.slane %v744_v17, 2  ;;  %v753_v25 = vadd.f32 %v752_v18, %v751_v14  ;;  %v937_v14 = vld [vmem:[%s2216_s12] ss:$0 sm:$0xff] }
 0x1a7   :  { %1314 = vmatpush3.bf16.msra.mxu1 %v1313_v15  ;;  %vm529_vm3 = vcmp.ge.f32.partialorder %v528_v21, 0.0  ;;  %v530_v24 = vmul.f32 0.2, %v528_v21 }
 0x1a8   :  { %v746_v28 = vadd.f32 %v745_v23, %v744_v17  ;;  %v754_v29 = vrot.slane %v753_v25, 2  ;;  %1347 = vmatprep.subr.bf16.mxu1 %v1571_v22 }
 0x1a9   :  { %v531_v32 = vsel %vm529_vm3, %v528_v21, %v530_v24 }
 0x1aa   :  { %v747_v33 = vrot.slane %v746_v28, 1  ;;  %v755_v34 = vadd.f32 %v754_v29, %v753_v25  ;;  %1166 = vmatmul.mubr.f32.vlgmr.msra.gmra.mrb[2].mxu1 %v531_v32 }
 0x1ab   :  { %1349 = vmatpush3.bf16.msra.mxu1 %v1348_v27  ;;  %1200 = vmatprep.mubr.msk.f32.mxu1 %vm1572_vm0, %v1573_v45  ;;  %v790_v45 = vld [vmem:[%s2221_s17 + $0x30] sm:$0xff] }
 0x1ac   :  { %v748_v36 = vadd.f32 %v747_v33, %v746_v28  ;;  %v756_v37 = vrot.slane %v755_v34, 1  ;;  %1350 = vmatprep.subr.bf16.mxu1 %v1571_v22  ;;  %v1357_v48 = vpack.c.bf16 %v791_v46, %v790_v45 }
 0x1ae   :  { %v749_v40 = vmul.f32 0.5, %v748_v36  ;;  %v757_v41 = vadd.f32 %v756_v37, %v755_v34 }
 0x1af   :  { %1352 = vmatpush3.bf16.msra.mxu1 %v1351_v35 }
 0x1b0   :  { %v758_v43 = vmul.f32 0.5, %v757_v41  ;;  %v759_v44 = vmul.f32 %v749_v40, %v749_v40  ;;  %1353 = vmatprep.subr.bf16.mxu1 %v1571_v22  ;;  %v761_v58 = vsub.f32 %v2076_v3, %v749_v40 }
 0x1b2   :  { %v760_v47 = vsub.f32 %v758_v43, %v759_v44 }
 0x1b3   :  { %1355 = vmatpush3.bf16.msra.mxu1 %v1354_v42 }
 0x1b4   :  { %v762_v49 = vadd.f32 1e-05, %v760_v47  ;;  %1356 = vmatprep.subr.bf16.mxu1 %v1571_v22 }
 0x1b6   :  { %1387 = vrsqrt.f32 %v762_v49 }
 0x1b7   :  { %1358 = vmatpush3.bf16.msra.mxu1 %v1357_v48 }
 0x1b8   :  { %1359 = vmatprep.subr.bf16.mxu1 %v1571_v22 }
 0x1bb   :  { %1361 = vmatpush3.bf16.msra.mxu1 %v1360_v52 }
 0x1bc   :  { %1362 = vmatprep.subr.bf16.mxu1 %v1571_v22 }
 0x1bf   :  { %1364 = vmatpush3.bf16.msra.mxu1 %v1363_v55 }
 0x1c0   :  { %v1388_v60 = vpop.eup %1387  ;;  %1365 = vmatprep.subr.bf16.mxu1 %v1571_v22 }
 0x1c1   :  { %v764_v26 = vmul.f32 %v1388_v60, %v761_v58 }
 0x1c3   :  { %1367 = vmatpush3.bf16.msra.mxu1 %v1366_v59  ;;  %v772_v2 = vmul.f32 %v939_v63, %v764_v26 }
 0x1c4   :  { %1368 = vmatprep.subr.bf16.mxu1 %v1571_v22 }
 0x1c5   :  { %v780_v3 = vadd.f32 %v940_v0, %v772_v2 }
 0x1c7   :  { %1370 = vmatpush3.bf16.msra.mxu1 %v1369_v1  ;;  %vm781_vm4 = vcmp.ge.f32.partialorder %v780_v3, 0.0  ;;  %v782_v4 = vmul.f32 0.2, %v780_v3 }
 0x1c9   :  { %v783_v5 = vsel %vm781_vm4, %v780_v3, %v782_v4 }
 0x1ca   :  { %1201 = vmatmul.mubr.f32.vlgmr.msra.gmra.mrb[4].mxu1 %v783_v5 }
 0x25d   :  { %v369_v7 = vpop.f32.mrb[0].mxu1 }
 0x25e   :  { %v370_v8 = vadd.f32 %v933_v6, %v369_v7  ;;  %v1132_v9 = vpop.f32.mrb[1].mxu1 }
 0x260   :  { %v373_v10 = vsub.f32 0.0, %v370_v8 }
 0x262   :  { %v374_v11 = vmul.f32 1.442695, %v373_v10 }
 0x264   :  { %1389 = vpow2.f32 %v374_v11 }
 0x26e   :  { %v1390_v12 = vpop.eup %1389 }
 0x26f   :  { %v376_v13 = vadd.f32 1.0, %v1390_v12 }
 0x271   :  { %1391 = vrcp.f32 %v376_v13 }
 0x27b   :  { %v1392_v22 = vpop.eup %1391 }
 0x27c   :  { %380 = vst.msk [vmem:[#allocation10] sm:$0x3] %vm379_vm5, %v1392_v22 }
 0x27d   :  { %v621_v15 = vpop.f32.mrb[2].mxu1 }
 0x27e   :  { %1500 = shalt.err (!%p1497_p8)
}
 0x27f   :  { %s1501_s7 = scalar_lea.hbm %s2223_s19, 32 }
 0x280   :  { %p1502_p9 = scmp.ne.s32.totalorder %s2223_s19, %s1501_s7  ;;  %p1505_p10 = scmp.lt.u32.totalorder %s1501_s7, %s2223_s19 }
 0x282   :  { %p1507_p11 = pnand %p1505_p10, %p1502_p9 }
 0x284   :  { %1510 = shalt.err (!%p1507_p11)
}
 0x285   :  { %894 = dma.vmem_to_hbm [thread:$0]  %s892_s16, 32, %s2223_s19, [#allocation4]   ;;  %v622_v16 = vadd.f32 %v937_v14, %v621_v15  ;;  %v1167_v17 = vpop.f32.mrb[3].mxu1  ;;  %vm631_vm6 = vcmask 254976   ;;  %v941_v25 = vld [vmem:[%s2222_s18] ss:$0 sm:$0xff] }
 0x286   :  { %s1575_s27 = smov [#allocation11]  }
 0x287   :  { %v625_v18 = vsub.f32 0.0, %v622_v16  ;;  %s901_s28 = sshll.u32 %s1575_s27, 4  ;;  %s902_s28 = int_to_ptr.vmem [resolvable:$true] %s901_s28 }
 0x288   :  { %s1511_s19 = scalar_lea.vmem %s902_s28, 32  ;;  %p1516_p13 = scmp.lt.s32.totalorder %s902_s28, %s902_s28 }
 0x289   :  { %v626_v19 = vmul.f32 1.442695, %v625_v18  ;;  %p1512_p12 = scmp.ne.s32.totalorder %s902_s28, %s1511_s19  ;;  %p1517_p0 = scmp.lt.s32.totalorder %s1511_s19, %s1511_s19 }
 0x28b   :  { %1393 = vpow2.f32 %v626_v19  ;;  %p1518_p1 = por %p1517_p0, %p1516_p13 }
 0x28d   :  { %p1519_p2 = pnand %p1518_p1, %p1512_p12 }
 0x295   :  { %v1394_v20 = vpop.eup %1393 }
 0x296   :  { %v628_v21 = vadd.f32 1.0, %v1394_v20 }
 0x298   :  { %1395 = vrcp.f32 %v628_v21 }
 0x29d   :  { %v873_v24 = vpop.f32.mrb[4].mxu1 }
 0x2a2   :  { %v1396_v23 = vpop.eup %1395 }
 0x2a3   :  { %632 = vst.msk [vmem:[#allocation11] sm:$0x3] %vm631_vm6, %v1396_v23 }
 0x2a4   :  { %1522 = shalt.err (!%p1519_p2)
}
 0x2a5   :  { %s1523_s3 = scalar_lea.hbm %s2224_s20, 32 }
 0x2a6   :  { %p1524_p3 = scmp.ne.s32.totalorder %s2224_s20, %s1523_s3  ;;  %p1527_p4 = scmp.lt.u32.totalorder %s1523_s3, %s2224_s20 }
 0x2a8   :  { %p1529_p5 = pnand %p1527_p4, %p1524_p3 }
 0x2aa   :  { %1532 = shalt.err (!%p1529_p5)
}
 0x2ab   :  { %904 = dma.vmem_to_hbm [thread:$0]  %s902_s28, 32, %s2224_s20, [#allocation12]   ;;  %v874_v27 = vadd.f32 %v941_v25, %v873_v24  ;;  %v1202_v28 = vpop.f32.mrb[5].mxu1  ;;  %vm883_vm7 = vcmask 123904  }
 0x2ac   :  { %s1576_s30 = smov [#allocation13]  }
 0x2ad   :  { %v877_v29 = vsub.f32 0.0, %v874_v27  ;;  %s911_s15 = sshll.u32 %s1576_s30, 4  ;;  %s912_s15 = int_to_ptr.vmem [resolvable:$true] %s911_s15 }
 0x2ae   :  { %s1533_s16 = scalar_lea.vmem %s912_s15, 32  ;;  %p1538_p7 = scmp.lt.s32.totalorder %s912_s15, %s912_s15 }
 0x2af   :  { %v878_v30 = vmul.f32 1.442695, %v877_v29  ;;  %p1534_p6 = scmp.ne.s32.totalorder %s912_s15, %s1533_s16  ;;  %p1539_p8 = scmp.lt.s32.totalorder %s1533_s16, %s1533_s16 }
 0x2b1   :  { %1397 = vpow2.f32 %v878_v30  ;;  %p1540_p9 = por %p1539_p8, %p1538_p7 }
 0x2b3   :  { %p1541_p10 = pnand %p1540_p9, %p1534_p6 }
 0x2bb   :  { %v1398_v31 = vpop.eup %1397 }
 0x2bc   :  { %v880_v32 = vadd.f32 1.0, %v1398_v31 }
 0x2be   :  { %1399 = vrcp.f32 %v880_v32 }
 0x2c8   :  { %v1400_v33 = vpop.eup %1399 }
 0x2c9   :  { %884 = vst.msk [vmem:[#allocation13] sm:$0x3] %vm883_vm7, %v1400_v33 }
 0x2ca   :  { %1544 = shalt.err (!%p1541_p10)
}
 0x2cb   :  { %s1545_s14 = scalar_lea.hbm %s2225_s21, 32 }
 0x2cc   :  { %p1546_p11 = scmp.ne.s32.totalorder %s2225_s21, %s1545_s14  ;;  %p1549_p12 = scmp.lt.u32.totalorder %s1545_s14, %s2225_s21 }
 0x2ce   :  { %p1551_p13 = pnand %p1549_p12, %p1546_p11 }
 0x2d0   :  { %1554 = shalt.err (!%p1551_p13)
}
 0x2d1   :  { %914 = dma.vmem_to_hbm [thread:$0]  %s912_s15, 32, %s2225_s21, [#allocation12]  }
 0x2d2   :  { %1561 = dma.done.wait [#allocation4], 32  }
 0x2d3   :  { %1562 = vsyncadd [#allocation4], 4294967264 }
 0x2d4   :  { %1563 = dma.done.wait [#allocation12], 64  }
 0x2d5   :  { %1564 = vsyncadd [#allocation12], 4294967232 }
 0x2d6   :  { %924 = vsyncpa [#allocation3], 1 }
 0x2d7   :  { %925 = vsyncpa [#allocation6], 1 }
 0x2d8   :  { %926 = vsyncpa [#allocation9], 1 }
 0x2d9   :  { %927 = vsyncpa [#allocation4], 1 }
 0x2da   :  { %928 = vsyncpa [#allocation12], 1 }

</bundles_post_ra>
